<compile_context>
chip_gen: v5e
topology: v5e:2x2
jax: 0.10.0
libtpu: 0.0.40
codegen_flags: <defaults>
</compile_context>

<pallas_src>
import functools
import re

import jax
import jax.numpy as jnp
from jax.experimental import pallas as pl
from jax.experimental.pallas import tpu as pltpu


def _round_up(v, m):
    return ((v + m - 1) // m) * m


def _tpu_generation():
    """Best-effort TPU generation from the device kind string (0 = unknown)."""
    try:
        kind = jax.devices()[0].device_kind.lower()
    except Exception:
        return 0
    m = re.search(r"v(\d+)", kind)
    return int(m.group(1)) if m else 0


def _sam_kernel(x_ref, wm_ref, cw_ref, o_ref, pmx_ref, pav_ref, *, C, W, HWP, KS):
    """Processes one batch tile.

    x_ref  : (TB, C, HWP)      input tile (VMEM), HWP = round_up(H*W, 128)
    wm_ref : (KS, HWP)         f32 column-validity mask per kw tap
    cw_ref : (2*KS*KS,)        conv weights, flattened [in_ch, kh, kw] (SMEM)
    o_ref  : (TB, C, HWP)      output tile
    pmx_ref / pav_ref : (TB, 2*PAD + HWP) zero-padded flat scratch for the
                        channel-max / channel-mean maps (f32)
    """
    TB = x_ref.shape[0]
    P = KS // 2
    PADL = pmx_ref.shape[1]
    PAD = (PADL - HWP) // 2

    # ---------- channel max / mean (no full-tile f32 materialization) ----------
    # Max is exact in the native dtype; the sum accumulates in f32 over small
    # channel chunks so the f32 transient stays bounded.
    CH = 8
    mx = None
    sm = jnp.zeros((TB, HWP), jnp.float32)
    for c0 in range(0, C, CH):
        c1 = min(c0 + CH, C)
        xc = x_ref[:, c0:c1, :]                       # (TB, cc, HWP), native dtype
        cm = jnp.max(xc, axis=1)
        mx = cm if mx is None else jnp.maximum(mx, cm)
        sm = sm + jnp.sum(xc.astype(jnp.float32), axis=1)
    mxf = mx.astype(jnp.float32)                      # (TB, HWP)
    avf = sm * (1.0 / C)                              # (TB, HWP)

    # ---------- stage pooled maps into zero-padded scratch (lane-aligned) ------
    # Re-zeroing the halo strips each step is a few vreg stores and stays
    # correct when the grid is split across cores (per-core scratch starts
    # uninitialised), so we do it unconditionally.
    zpad = jnp.zeros((TB, PAD), jnp.float32)
    pmx_ref[:, 0:PAD] = zpad
    pmx_ref[:, PAD + HWP:PADL] = zpad
    pav_ref[:, 0:PAD] = zpad
    pav_ref[:, PAD + HWP:PADL] = zpad
    pmx_ref[:, PAD:PAD + HWP] = mxf
    pav_ref[:, PAD:PAD + HWP] = avf

    # ---------- KSxKS conv, 2 in-channels -> 1 out --------------------------------
    # Row masks are unnecessary: out-of-range rows read the zero halo
    # (PAD >= P*W + P) or are killed by the column mask.  The column mask is
    # applied once per kw (hoisted out of the (ci, kh) accumulation).
    # Two inner + two outer accumulators break the serial vadd chain while
    # keeping vreg pressure moderate.
    outer = [jnp.zeros((TB, HWP), jnp.float32) for _ in range(2)]
    for kw in range(KS):
        inner = [jnp.zeros((TB, HWP), jnp.float32) for _ in range(2)]
        t = 0
        for ci, src_ref in enumerate((pmx_ref, pav_ref)):
            for kh in range(KS):
                s = (kh - P) * W + (kw - P)                      # flat shift
                shifted = src_ref[:, PAD + s:PAD + s + HWP]      # (TB, HWP)
                w = cw_ref[ci * KS * KS + kh * KS + kw]          # SMEM scalar
                inner[t & 1] = inner[t & 1] + w * shifted
                t += 1
        wmask = wm_ref[kw:kw + 1, :]                             # (1, HWP)
        outer[kw & 1] = outer[kw & 1] + (inner[0] + inner[1]) * wmask
    conv = outer[0] + outer[1]                                   # (TB, HWP), f32

    # ---------- spatial gate: out = conv * x (native dtype, broadcast over C) ----
    o_ref[...] = conv.astype(o_ref.dtype)[:, None, :] * x_ref[...]


def _pick_batch_tile(B, C, HWP, PADL, itemsize, KS, gen):
    """Pick the batch tile from real per-generation VMEM limits.

    Returns (TB, vmem_limit_bytes).
    """
    # Real VMEM per batch row:
    #   2x double-buffered input tile + 2x double-buffered output tile
    #   + two padded f32 scratch rows + f32 conv intermediates
    #     (pooled maps, 4 accumulators, channel-chunk casts, shifted temps).
    per_row = ((2 + 2) * itemsize * C * HWP
               + 2 * 4 * PADL
               + 10 * 4 * HWP)
    # Per-step fixed cost: double-buffered column-mask input + slack.
    fixed = 2 * KS * HWP * 4 + (1 << 20)

    is_v7 = gen >= 7
    known = gen > 0
    if is_v7:
        budget = 40 << 20          # v7x: 64 MiB physical VMEM
        limit_cap = 48 << 20
    elif known:
        budget = 28 << 20          # v5e/v6e: 128 MiB physical VMEM
        limit_cap = 96 << 20
    else:
        budget = 20 << 20          # unknown chip: be conservative
        limit_cap = 48 << 20

    cap = max(1, (budget - fixed) // per_row)
    if is_v7 and B >= 2:
        cap = min(cap, max(1, B // 2))   # >= 2 grid steps so both TCs get work
    cap = max(1, min(cap, B))

    best, best_key = None, None
    for t in range(1, cap + 1):
        if B % t:
            continue
        steps = B // t
        key = (t % 8 == 0,                                  # sublane occupancy
               (steps % 2 == 0) if is_v7 else True,         # even split on v7x
               t)                                           # then largest tile
        if best_key is None or key > best_key:
            best, best_key = t, key
    tb = best if best is not None else 1

    usage = fixed + tb * per_row
    vmem_limit = int(min(max(32 << 20, usage + (8 << 20)), limit_cap))
    return tb, vmem_limit


def sam_forward(x, conv_w):
    """x: (B, C, H, W); conv_w: (2, KS, KS) = Conv2d(2 -> 1, KSxKS, no bias) weight."""
    B, C, H, W = x.shape
    KS = conv_w.shape[-1]
    P = KS // 2
    HW = H * W
    HWP = _round_up(HW, 128)                  # lane-dense spatial length

    xf = x.reshape(B, C, HW)
    if HWP != HW:
        xf = jnp.pad(xf, ((0, 0), (0, 0), (0, HWP - HW)))

    cwf = conv_w.reshape(-1).astype(jnp.float32)          # (2*KS*KS,) SMEM scalars

    # Column-validity mask per kw tap, precomputed host-side (lane-dense f32).
    idx = jnp.arange(HWP, dtype=jnp.int32)
    col = idx % W
    valid = idx < HW
    wmask = jnp.stack(
        [((col + (kw - P) >= 0) & (col + (kw - P) < W) & valid).astype(jnp.float32)
         for kw in range(KS)], axis=0)                     # (KS, HWP)

    PAD = _round_up(P * W + P, 128)                        # lane-aligned halo
    PADL = 2 * PAD + HWP

    gen = _tpu_generation()
    TB, vmem_limit = _pick_batch_tile(B, C, HWP, PADL, x.dtype.itemsize, KS, gen)
    grid = (B // TB,)

    kernel = functools.partial(_sam_kernel, C=C, W=W, HWP=HWP, KS=KS)

    out = pl.pallas_call(
        kernel,
        out_shape=jax.ShapeDtypeStruct((B, C, HWP), x.dtype),
        grid=grid,
        in_specs=[
            pl.BlockSpec((TB, C, HWP), lambda b: (b, 0, 0)),
            pl.BlockSpec((KS, HWP), lambda b: (0, 0)),
            pl.BlockSpec(memory_space=pltpu.MemorySpace.SMEM),   # conv weights
        ],
        out_specs=pl.BlockSpec((TB, C, HWP), lambda b: (b, 0, 0)),
        scratch_shapes=[
            pltpu.VMEM((TB, PADL), jnp.float32),
            pltpu.VMEM((TB, PADL), jnp.float32),
        ],
        compiler_params=pltpu.CompilerParams(
            dimension_semantics=("parallel",),
            vmem_limit_bytes=vmem_limit),
    )(xf, wmask, cwf)

    return out[:, :, :HW].reshape(B, C, H, W)


def sam_reference(x, conv_w):
    """Pure-JAX reference mirroring the PyTorch SAM module."""
    mx = jnp.max(x, axis=1, keepdims=True)
    av = jnp.mean(x, axis=1, keepdims=True)
    cc = jnp.concatenate([mx, av], axis=1)                 # (B, 2, H, W)
    P = conv_w.shape[-1] // 2
    conv = jax.lax.conv_general_dilated(
        cc, conv_w[None].astype(x.dtype), window_strides=(1, 1),
        padding=[(P, P), (P, P)],
        dimension_numbers=("NCHW", "OIHW", "NCHW"))        # (B, 1, H, W), no bias
    return conv * x


if __name__ == "__main__":
    B, C, H, W, KS = 2, 4, 16, 16, 7

    key = jax.random.PRNGKey(0)
    kx, kw = jax.random.split(key)
    x = jax.random.normal(kx, (B, C, H, W), jnp.float32)
    conv_w = jax.random.normal(kw, (2, KS, KS), jnp.float32) * 0.1

    out = jax.block_until_ready(sam_forward(x, conv_w))
    ref = jax.block_until_ready(sam_reference(x, conv_w))

    assert out.shape == (B, C, H, W)
    err = float(jnp.max(jnp.abs(out - ref)))
    assert jnp.allclose(out, ref, atol=1e-4, rtol=1e-4), err

    print("KERNEL_OK")
</pallas_src>

<mosaic_0001>
module attributes {stable_mosaic.version = 11 : i64} {
  func.func @_sam_kernel(%arg0: i32, %arg1: memref<2x4x256xf32, #tpu.memory_space<vmem>>, %arg2: memref<7x256xf32, #tpu.memory_space<vmem>>, %arg3: memref<98xf32, #tpu.memory_space<smem>>, %arg4: memref<2x4x256xf32, #tpu.memory_space<vmem>>, %arg5: memref<2x512xf32, #tpu.memory_space<vmem>>, %arg6: memref<2x512xf32, #tpu.memory_space<vmem>>) attributes {dimension_semantics = [#tpu.dimension_semantics<parallel>], iteration_bounds = array<i64: 1>, scalar_prefetch = 0 : i64, scratch_operands = 2 : i64, tpu.core_type = #tpu.core_type<tc>, window_params = [{transform_indices = @transform_0, window_bounds = array<i64: 2, 4, 256>}, {pipeline_mode = #tpu.pipeline_mode<synchronous>, transform_indices = @transform_1, window_bounds = array<i64: 7, 256>}, {transform_indices = @transform_2, window_bounds = array<i64: 98>}, {transform_indices = @transform_3, window_bounds = array<i64: 2, 4, 256>}]} {
    %cst = arith.constant 0.000000e+00 : f32
    %0 = vector.broadcast %cst : f32 to vector<2x256xf32>
    %c0 = arith.constant 0 : index
    %c0_0 = arith.constant 0 : index
    %c0_1 = arith.constant 0 : index
    %1 = vector.load %arg1[%c0, %c0_0, %c0_1] : memref<2x4x256xf32, #tpu.memory_space<vmem>>, vector<2x4x256xf32>
    %cst_2 = arith.constant dense<0xFF800000> : vector<2x256xf32>
    %2 = vector.multi_reduction <maximumf>, %1, %cst_2 [1] : vector<2x4x256xf32> to vector<2x256xf32>
    %cst_3 = arith.constant dense<0.000000e+00> : vector<2x256xf32>
    %3 = vector.multi_reduction <add>, %1, %cst_3 [1] : vector<2x4x256xf32> to vector<2x256xf32>
    %4 = arith.addf %0, %3 : vector<2x256xf32>
    %cst_4 = arith.constant 2.500000e-01 : f32
    %5 = vector.broadcast %cst_4 : f32 to vector<2x256xf32>
    %6 = arith.mulf %4, %5 : vector<2x256xf32>
    %cst_5 = arith.constant 0.000000e+00 : f32
    %7 = vector.broadcast %cst_5 : f32 to vector<2x128xf32>
    %c0_6 = arith.constant 0 : index
    %c0_7 = arith.constant 0 : index
    %8 = vector.load %arg5[%c0_6, %c0_7] : memref<2x512xf32, #tpu.memory_space<vmem>>, vector<2x128xf32>
    tpu.vector_store %arg5[%c0_6, %c0_7], %7 {strides = array<i32>} : memref<2x512xf32, #tpu.memory_space<vmem>>, vector<2x128xf32>,
    %c0_8 = arith.constant 0 : index
    %c384 = arith.constant 384 : index
    %9 = vector.load %arg5[%c0_8, %c384] : memref<2x512xf32, #tpu.memory_space<vmem>>, vector<2x128xf32>
    tpu.vector_store %arg5[%c0_8, %c384], %7 {strides = array<i32>} : memref<2x512xf32, #tpu.memory_space<vmem>>, vector<2x128xf32>,
    %c0_9 = arith.constant 0 : index
    %c0_10 = arith.constant 0 : index
    %10 = vector.load %arg6[%c0_9, %c0_10] : memref<2x512xf32, #tpu.memory_space<vmem>>, vector<2x128xf32>
    tpu.vector_store %arg6[%c0_9, %c0_10], %7 {strides = array<i32>} : memref<2x512xf32, #tpu.memory_space<vmem>>, vector<2x128xf32>,
    %c0_11 = arith.constant 0 : index
    %c384_12 = arith.constant 384 : index
    %11 = vector.load %arg6[%c0_11, %c384_12] : memref<2x512xf32, #tpu.memory_space<vmem>>, vector<2x128xf32>
    tpu.vector_store %arg6[%c0_11, %c384_12], %7 {strides = array<i32>} : memref<2x512xf32, #tpu.memory_space<vmem>>, vector<2x128xf32>,
    %c0_13 = arith.constant 0 : index
    %c128 = arith.constant 128 : index
    %12 = vector.load %arg5[%c0_13, %c128] : memref<2x512xf32, #tpu.memory_space<vmem>>, vector<2x256xf32>
    tpu.vector_store %arg5[%c0_13, %c128], %2 {strides = array<i32>} : memref<2x512xf32, #tpu.memory_space<vmem>>, vector<2x256xf32>,
    %c0_14 = arith.constant 0 : index
    %c128_15 = arith.constant 128 : index
    %13 = vector.load %arg6[%c0_14, %c128_15] : memref<2x512xf32, #tpu.memory_space<vmem>>, vector<2x256xf32>
    tpu.vector_store %arg6[%c0_14, %c128_15], %6 {strides = array<i32>} : memref<2x512xf32, #tpu.memory_space<vmem>>, vector<2x256xf32>,
    %cst_16 = arith.constant 0.000000e+00 : f32
    %14 = vector.broadcast %cst_16 : f32 to vector<2x256xf32>
    %cst_17 = arith.constant 0.000000e+00 : f32
    %15 = vector.broadcast %cst_17 : f32 to vector<2x256xf32>
    %cst_18 = arith.constant 0.000000e+00 : f32
    %16 = vector.broadcast %cst_18 : f32 to vector<2x256xf32>
    %cst_19 = arith.constant 0.000000e+00 : f32
    %17 = vector.broadcast %cst_19 : f32 to vector<2x256xf32>
    %c0_20 = arith.constant 0 : index
    %c77 = arith.constant 77 : index
    %18 = vector.load %arg5[%c0_20, %c77] : memref<2x512xf32, #tpu.memory_space<vmem>>, vector<2x256xf32>
    %c0_21 = arith.constant 0 : index
    %19 = memref.load %arg3[%c0_21] : memref<98xf32, #tpu.memory_space<smem>>
    %20 = vector.broadcast %19 : f32 to vector<2x256xf32>
    %21 = arith.mulf %20, %18 : vector<2x256xf32>
    %22 = arith.addf %16, %21 : vector<2x256xf32>
    %c0_22 = arith.constant 0 : index
    %c93 = arith.constant 93 : index
    %23 = vector.load %arg5[%c0_22, %c93] : memref<2x512xf32, #tpu.memory_space<vmem>>, vector<2x256xf32>
    %c7 = arith.constant 7 : index
    %24 = memref.load %arg3[%c7] : memref<98xf32, #tpu.memory_space<smem>>
    %25 = vector.broadcast %24 : f32 to vector<2x256xf32>
    %26 = arith.mulf %25, %23 : vector<2x256xf32>
    %27 = arith.addf %17, %26 : vector<2x256xf32>
    %c0_23 = arith.constant 0 : index
    %c109 = arith.constant 109 : index
    %28 = vector.load %arg5[%c0_23, %c109] : memref<2x512xf32, #tpu.memory_space<vmem>>, vector<2x256xf32>
    %c14 = arith.constant 14 : index
    %29 = memref.load %arg3[%c14] : memref<98xf32, #tpu.memory_space<smem>>
    %30 = vector.broadcast %29 : f32 to vector<2x256xf32>
    %31 = arith.mulf %30, %28 : vector<2x256xf32>
    %32 = arith.addf %22, %31 : vector<2x256xf32>
    %c0_24 = arith.constant 0 : index
    %c125 = arith.constant 125 : index
    %33 = vector.load %arg5[%c0_24, %c125] : memref<2x512xf32, #tpu.memory_space<vmem>>, vector<2x256xf32>
    %c21 = arith.constant 21 : index
    %34 = memref.load %arg3[%c21] : memref<98xf32, #tpu.memory_space<smem>>
    %35 = vector.broadcast %34 : f32 to vector<2x256xf32>
    %36 = arith.mulf %35, %33 : vector<2x256xf32>
    %37 = arith.addf %27, %36 : vector<2x256xf32>
    %c0_25 = arith.constant 0 : index
    %c141 = arith.constant 141 : index
    %38 = vector.load %arg5[%c0_25, %c141] : memref<2x512xf32, #tpu.memory_space<vmem>>, vector<2x256xf32>
    %c28 = arith.constant 28 : index
    %39 = memref.load %arg3[%c28] : memref<98xf32, #tpu.memory_space<smem>>
    %40 = vector.broadcast %39 : f32 to vector<2x256xf32>
    %41 = arith.mulf %40, %38 : vector<2x256xf32>
    %42 = arith.addf %32, %41 : vector<2x256xf32>
    %c0_26 = arith.constant 0 : index
    %c157 = arith.constant 157 : index
    %43 = vector.load %arg5[%c0_26, %c157] : memref<2x512xf32, #tpu.memory_space<vmem>>, vector<2x256xf32>
    %c35 = arith.constant 35 : index
    %44 = memref.load %arg3[%c35] : memref<98xf32, #tpu.memory_space<smem>>
    %45 = vector.broadcast %44 : f32 to vector<2x256xf32>
    %46 = arith.mulf %45, %43 : vector<2x256xf32>
    %47 = arith.addf %37, %46 : vector<2x256xf32>
    %c0_27 = arith.constant 0 : index
    %c173 = arith.constant 173 : index
    %48 = vector.load %arg5[%c0_27, %c173] : memref<2x512xf32, #tpu.memory_space<vmem>>, vector<2x256xf32>
    %c42 = arith.constant 42 : index
    %49 = memref.load %arg3[%c42] : memref<98xf32, #tpu.memory_space<smem>>
    %50 = vector.broadcast %49 : f32 to vector<2x256xf32>
    %51 = arith.mulf %50, %48 : vector<2x256xf32>
    %52 = arith.addf %42, %51 : vector<2x256xf32>
    %c0_28 = arith.constant 0 : index
    %c77_29 = arith.constant 77 : index
    %53 = vector.load %arg6[%c0_28, %c77_29] : memref<2x512xf32, #tpu.memory_space<vmem>>, vector<2x256xf32>
    %c49 = arith.constant 49 : index
    %54 = memref.load %arg3[%c49] : memref<98xf32, #tpu.memory_space<smem>>
    %55 = vector.broadcast %54 : f32 to vector<2x256xf32>
    %56 = arith.mulf %55, %53 : vector<2x256xf32>
    %57 = arith.addf %47, %56 : vector<2x256xf32>
    %c0_30 = arith.constant 0 : index
    %c93_31 = arith.constant 93 : index
    %58 = vector.load %arg6[%c0_30, %c93_31] : memref<2x512xf32, #tpu.memory_space<vmem>>, vector<2x256xf32>
    %c56 = arith.constant 56 : index
    %59 = memref.load %arg3[%c56] : memref<98xf32, #tpu.memory_space<smem>>
    %60 = vector.broadcast %59 : f32 to vector<2x256xf32>
    %61 = arith.mulf %60, %58 : vector<2x256xf32>
    %62 = arith.addf %52, %61 : vector<2x256xf32>
    %c0_32 = arith.constant 0 : index
    %c109_33 = arith.constant 109 : index
    %63 = vector.load %arg6[%c0_32, %c109_33] : memref<2x512xf32, #tpu.memory_space<vmem>>, vector<2x256xf32>
    %c63 = arith.constant 63 : index
    %64 = memref.load %arg3[%c63] : memref<98xf32, #tpu.memory_space<smem>>
    %65 = vector.broadcast %64 : f32 to vector<2x256xf32>
    %66 = arith.mulf %65, %63 : vector<2x256xf32>
    %67 = arith.addf %57, %66 : vector<2x256xf32>
    %c0_34 = arith.constant 0 : index
    %c125_35 = arith.constant 125 : index
    %68 = vector.load %arg6[%c0_34, %c125_35] : memref<2x512xf32, #tpu.memory_space<vmem>>, vector<2x256xf32>
    %c70 = arith.constant 70 : index
    %69 = memref.load %arg3[%c70] : memref<98xf32, #tpu.memory_space<smem>>
    %70 = vector.broadcast %69 : f32 to vector<2x256xf32>
    %71 = arith.mulf %70, %68 : vector<2x256xf32>
    %72 = arith.addf %62, %71 : vector<2x256xf32>
    %c0_36 = arith.constant 0 : index
    %c141_37 = arith.constant 141 : index
    %73 = vector.load %arg6[%c0_36, %c141_37] : memref<2x512xf32, #tpu.memory_space<vmem>>, vector<2x256xf32>
    %c77_38 = arith.constant 77 : index
    %74 = memref.load %arg3[%c77_38] : memref<98xf32, #tpu.memory_space<smem>>
    %75 = vector.broadcast %74 : f32 to vector<2x256xf32>
    %76 = arith.mulf %75, %73 : vector<2x256xf32>
    %77 = arith.addf %67, %76 : vector<2x256xf32>
    %c0_39 = arith.constant 0 : index
    %c157_40 = arith.constant 157 : index
    %78 = vector.load %arg6[%c0_39, %c157_40] : memref<2x512xf32, #tpu.memory_space<vmem>>, vector<2x256xf32>
    %c84 = arith.constant 84 : index
    %79 = memref.load %arg3[%c84] : memref<98xf32, #tpu.memory_space<smem>>
    %80 = vector.broadcast %79 : f32 to vector<2x256xf32>
    %81 = arith.mulf %80, %78 : vector<2x256xf32>
    %82 = arith.addf %72, %81 : vector<2x256xf32>
    %c0_41 = arith.constant 0 : index
    %c173_42 = arith.constant 173 : index
    %83 = vector.load %arg6[%c0_41, %c173_42] : memref<2x512xf32, #tpu.memory_space<vmem>>, vector<2x256xf32>
    %c91 = arith.constant 91 : index
    %84 = memref.load %arg3[%c91] : memref<98xf32, #tpu.memory_space<smem>>
    %85 = vector.broadcast %84 : f32 to vector<2x256xf32>
    %86 = arith.mulf %85, %83 : vector<2x256xf32>
    %87 = arith.addf %77, %86 : vector<2x256xf32>
    %c0_43 = arith.constant 0 : index
    %c0_44 = arith.constant 0 : index
    %88 = vector.load %arg2[%c0_43, %c0_44] : memref<7x256xf32, #tpu.memory_space<vmem>>, vector<1x256xf32>
    %89 = arith.addf %82, %87 : vector<2x256xf32>
    %90 = vector.broadcast %88 : vector<1x256xf32> to vector<2x256xf32>
    %91 = arith.mulf %89, %90 : vector<2x256xf32>
    %92 = arith.addf %14, %91 : vector<2x256xf32>
    %cst_45 = arith.constant 0.000000e+00 : f32
    %93 = vector.broadcast %cst_45 : f32 to vector<2x256xf32>
    %cst_46 = arith.constant 0.000000e+00 : f32
    %94 = vector.broadcast %cst_46 : f32 to vector<2x256xf32>
    %c0_47 = arith.constant 0 : index
    %c78 = arith.constant 78 : index
    %95 = vector.load %arg5[%c0_47, %c78] : memref<2x512xf32, #tpu.memory_space<vmem>>, vector<2x256xf32>
    %c1 = arith.constant 1 : index
    %96 = memref.load %arg3[%c1] : memref<98xf32, #tpu.memory_space<smem>>
    %97 = vector.broadcast %96 : f32 to vector<2x256xf32>
    %98 = arith.mulf %97, %95 : vector<2x256xf32>
    %99 = arith.addf %93, %98 : vector<2x256xf32>
    %c0_48 = arith.constant 0 : index
    %c94 = arith.constant 94 : index
    %100 = vector.load %arg5[%c0_48, %c94] : memref<2x512xf32, #tpu.memory_space<vmem>>, vector<2x256xf32>
    %c8 = arith.constant 8 : index
    %101 = memref.load %arg3[%c8] : memref<98xf32, #tpu.memory_space<smem>>
    %102 = vector.broadcast %101 : f32 to vector<2x256xf32>
    %103 = arith.mulf %102, %100 : vector<2x256xf32>
    %104 = arith.addf %94, %103 : vector<2x256xf32>
    %c0_49 = arith.constant 0 : index
    %c110 = arith.constant 110 : index
    %105 = vector.load %arg5[%c0_49, %c110] : memref<2x512xf32, #tpu.memory_space<vmem>>, vector<2x256xf32>
    %c15 = arith.constant 15 : index
    %106 = memref.load %arg3[%c15] : memref<98xf32, #tpu.memory_space<smem>>
    %107 = vector.broadcast %106 : f32 to vector<2x256xf32>
    %108 = arith.mulf %107, %105 : vector<2x256xf32>
    %109 = arith.addf %99, %108 : vector<2x256xf32>
    %c0_50 = arith.constant 0 : index
    %c126 = arith.constant 126 : index
    %110 = vector.load %arg5[%c0_50, %c126] : memref<2x512xf32, #tpu.memory_space<vmem>>, vector<2x256xf32>
    %c22 = arith.constant 22 : index
    %111 = memref.load %arg3[%c22] : memref<98xf32, #tpu.memory_space<smem>>
    %112 = vector.broadcast %111 : f32 to vector<2x256xf32>
    %113 = arith.mulf %112, %110 : vector<2x256xf32>
    %114 = arith.addf %104, %113 : vector<2x256xf32>
    %c0_51 = arith.constant 0 : index
    %c142 = arith.constant 142 : index
    %115 = vector.load %arg5[%c0_51, %c142] : memref<2x512xf32, #tpu.memory_space<vmem>>, vector<2x256xf32>
    %c29 = arith.constant 29 : index
    %116 = memref.load %arg3[%c29] : memref<98xf32, #tpu.memory_space<smem>>
    %117 = vector.broadcast %116 : f32 to vector<2x256xf32>
    %118 = arith.mulf %117, %115 : vector<2x256xf32>
    %119 = arith.addf %109, %118 : vector<2x256xf32>
    %c0_52 = arith.constant 0 : index
    %c158 = arith.constant 158 : index
    %120 = vector.load %arg5[%c0_52, %c158] : memref<2x512xf32, #tpu.memory_space<vmem>>, vector<2x256xf32>
    %c36 = arith.constant 36 : index
    %121 = memref.load %arg3[%c36] : memref<98xf32, #tpu.memory_space<smem>>
    %122 = vector.broadcast %121 : f32 to vector<2x256xf32>
    %123 = arith.mulf %122, %120 : vector<2x256xf32>
    %124 = arith.addf %114, %123 : vector<2x256xf32>
    %c0_53 = arith.constant 0 : index
    %c174 = arith.constant 174 : index
    %125 = vector.load %arg5[%c0_53, %c174] : memref<2x512xf32, #tpu.memory_space<vmem>>, vector<2x256xf32>
    %c43 = arith.constant 43 : index
    %126 = memref.load %arg3[%c43] : memref<98xf32, #tpu.memory_space<smem>>
    %127 = vector.broadcast %126 : f32 to vector<2x256xf32>
    %128 = arith.mulf %127, %125 : vector<2x256xf32>
    %129 = arith.addf %119, %128 : vector<2x256xf32>
    %c0_54 = arith.constant 0 : index
    %c78_55 = arith.constant 78 : index
    %130 = vector.load %arg6[%c0_54, %c78_55] : memref<2x512xf32, #tpu.memory_space<vmem>>, vector<2x256xf32>
    %c50 = arith.constant 50 : index
    %131 = memref.load %arg3[%c50] : memref<98xf32, #tpu.memory_space<smem>>
    %132 = vector.broadcast %131 : f32 to vector<2x256xf32>
    %133 = arith.mulf %132, %130 : vector<2x256xf32>
    %134 = arith.addf %124, %133 : vector<2x256xf32>
    %c0_56 = arith.constant 0 : index
    %c94_57 = arith.constant 94 : index
    %135 = vector.load %arg6[%c0_56, %c94_57] : memref<2x512xf32, #tpu.memory_space<vmem>>, vector<2x256xf32>
    %c57 = arith.constant 57 : index
    %136 = memref.load %arg3[%c57] : memref<98xf32, #tpu.memory_space<smem>>
    %137 = vector.broadcast %136 : f32 to vector<2x256xf32>
    %138 = arith.mulf %137, %135 : vector<2x256xf32>
    %139 = arith.addf %129, %138 : vector<2x256xf32>
    %c0_58 = arith.constant 0 : index
    %c110_59 = arith.constant 110 : index
    %140 = vector.load %arg6[%c0_58, %c110_59] : memref<2x512xf32, #tpu.memory_space<vmem>>, vector<2x256xf32>
    %c64 = arith.constant 64 : index
    %141 = memref.load %arg3[%c64] : memref<98xf32, #tpu.memory_space<smem>>
    %142 = vector.broadcast %141 : f32 to vector<2x256xf32>
    %143 = arith.mulf %142, %140 : vector<2x256xf32>
    %144 = arith.addf %134, %143 : vector<2x256xf32>
    %c0_60 = arith.constant 0 : index
    %c126_61 = arith.constant 126 : index
    %145 = vector.load %arg6[%c0_60, %c126_61] : memref<2x512xf32, #tpu.memory_space<vmem>>, vector<2x256xf32>
    %c71 = arith.constant 71 : index
    %146 = memref.load %arg3[%c71] : memref<98xf32, #tpu.memory_space<smem>>
    %147 = vector.broadcast %146 : f32 to vector<2x256xf32>
    %148 = arith.mulf %147, %145 : vector<2x256xf32>
    %149 = arith.addf %139, %148 : vector<2x256xf32>
    %c0_62 = arith.constant 0 : index
    %c142_63 = arith.constant 142 : index
    %150 = vector.load %arg6[%c0_62, %c142_63] : memref<2x512xf32, #tpu.memory_space<vmem>>, vector<2x256xf32>
    %c78_64 = arith.constant 78 : index
    %151 = memref.load %arg3[%c78_64] : memref<98xf32, #tpu.memory_space<smem>>
    %152 = vector.broadcast %151 : f32 to vector<2x256xf32>
    %153 = arith.mulf %152, %150 : vector<2x256xf32>
    %154 = arith.addf %144, %153 : vector<2x256xf32>
    %c0_65 = arith.constant 0 : index
    %c158_66 = arith.constant 158 : index
    %155 = vector.load %arg6[%c0_65, %c158_66] : memref<2x512xf32, #tpu.memory_space<vmem>>, vector<2x256xf32>
    %c85 = arith.constant 85 : index
    %156 = memref.load %arg3[%c85] : memref<98xf32, #tpu.memory_space<smem>>
    %157 = vector.broadcast %156 : f32 to vector<2x256xf32>
    %158 = arith.mulf %157, %155 : vector<2x256xf32>
    %159 = arith.addf %149, %158 : vector<2x256xf32>
    %c0_67 = arith.constant 0 : index
    %c174_68 = arith.constant 174 : index
    %160 = vector.load %arg6[%c0_67, %c174_68] : memref<2x512xf32, #tpu.memory_space<vmem>>, vector<2x256xf32>
    %c92 = arith.constant 92 : index
    %161 = memref.load %arg3[%c92] : memref<98xf32, #tpu.memory_space<smem>>
    %162 = vector.broadcast %161 : f32 to vector<2x256xf32>
    %163 = arith.mulf %162, %160 : vector<2x256xf32>
    %164 = arith.addf %154, %163 : vector<2x256xf32>
    %c1_69 = arith.constant 1 : index
    %c0_70 = arith.constant 0 : index
    %165 = vector.load %arg2[%c1_69, %c0_70] : memref<7x256xf32, #tpu.memory_space<vmem>>, vector<1x256xf32>
    %166 = arith.addf %159, %164 : vector<2x256xf32>
    %167 = vector.broadcast %165 : vector<1x256xf32> to vector<2x256xf32>
    %168 = arith.mulf %166, %167 : vector<2x256xf32>
    %169 = arith.addf %15, %168 : vector<2x256xf32>
    %cst_71 = arith.constant 0.000000e+00 : f32
    %170 = vector.broadcast %cst_71 : f32 to vector<2x256xf32>
    %cst_72 = arith.constant 0.000000e+00 : f32
    %171 = vector.broadcast %cst_72 : f32 to vector<2x256xf32>
    %c0_73 = arith.constant 0 : index
    %c79 = arith.constant 79 : index
    %172 = vector.load %arg5[%c0_73, %c79] : memref<2x512xf32, #tpu.memory_space<vmem>>, vector<2x256xf32>
    %c2 = arith.constant 2 : index
    %173 = memref.load %arg3[%c2] : memref<98xf32, #tpu.memory_space<smem>>
    %174 = vector.broadcast %173 : f32 to vector<2x256xf32>
    %175 = arith.mulf %174, %172 : vector<2x256xf32>
    %176 = arith.addf %170, %175 : vector<2x256xf32>
    %c0_74 = arith.constant 0 : index
    %c95 = arith.constant 95 : index
    %177 = vector.load %arg5[%c0_74, %c95] : memref<2x512xf32, #tpu.memory_space<vmem>>, vector<2x256xf32>
    %c9 = arith.constant 9 : index
    %178 = memref.load %arg3[%c9] : memref<98xf32, #tpu.memory_space<smem>>
    %179 = vector.broadcast %178 : f32 to vector<2x256xf32>
    %180 = arith.mulf %179, %177 : vector<2x256xf32>
    %181 = arith.addf %171, %180 : vector<2x256xf32>
    %c0_75 = arith.constant 0 : index
    %c111 = arith.constant 111 : index
    %182 = vector.load %arg5[%c0_75, %c111] : memref<2x512xf32, #tpu.memory_space<vmem>>, vector<2x256xf32>
    %c16 = arith.constant 16 : index
    %183 = memref.load %arg3[%c16] : memref<98xf32, #tpu.memory_space<smem>>
    %184 = vector.broadcast %183 : f32 to vector<2x256xf32>
    %185 = arith.mulf %184, %182 : vector<2x256xf32>
    %186 = arith.addf %176, %185 : vector<2x256xf32>
    %c0_76 = arith.constant 0 : index
    %c127 = arith.constant 127 : index
    %187 = vector.load %arg5[%c0_76, %c127] : memref<2x512xf32, #tpu.memory_space<vmem>>, vector<2x256xf32>
    %c23 = arith.constant 23 : index
    %188 = memref.load %arg3[%c23] : memref<98xf32, #tpu.memory_space<smem>>
    %189 = vector.broadcast %188 : f32 to vector<2x256xf32>
    %190 = arith.mulf %189, %187 : vector<2x256xf32>
    %191 = arith.addf %181, %190 : vector<2x256xf32>
    %c0_77 = arith.constant 0 : index
    %c143 = arith.constant 143 : index
    %192 = vector.load %arg5[%c0_77, %c143] : memref<2x512xf32, #tpu.memory_space<vmem>>, vector<2x256xf32>
    %c30 = arith.constant 30 : index
    %193 = memref.load %arg3[%c30] : memref<98xf32, #tpu.memory_space<smem>>
    %194 = vector.broadcast %193 : f32 to vector<2x256xf32>
    %195 = arith.mulf %194, %192 : vector<2x256xf32>
    %196 = arith.addf %186, %195 : vector<2x256xf32>
    %c0_78 = arith.constant 0 : index
    %c159 = arith.constant 159 : index
    %197 = vector.load %arg5[%c0_78, %c159] : memref<2x512xf32, #tpu.memory_space<vmem>>, vector<2x256xf32>
    %c37 = arith.constant 37 : index
    %198 = memref.load %arg3[%c37] : memref<98xf32, #tpu.memory_space<smem>>
    %199 = vector.broadcast %198 : f32 to vector<2x256xf32>
    %200 = arith.mulf %199, %197 : vector<2x256xf32>
    %201 = arith.addf %191, %200 : vector<2x256xf32>
    %c0_79 = arith.constant 0 : index
    %c175 = arith.constant 175 : index
    %202 = vector.load %arg5[%c0_79, %c175] : memref<2x512xf32, #tpu.memory_space<vmem>>, vector<2x256xf32>
    %c44 = arith.constant 44 : index
    %203 = memref.load %arg3[%c44] : memref<98xf32, #tpu.memory_space<smem>>
    %204 = vector.broadcast %203 : f32 to vector<2x256xf32>
    %205 = arith.mulf %204, %202 : vector<2x256xf32>
    %206 = arith.addf %196, %205 : vector<2x256xf32>
    %c0_80 = arith.constant 0 : index
    %c79_81 = arith.constant 79 : index
    %207 = vector.load %arg6[%c0_80, %c79_81] : memref<2x512xf32, #tpu.memory_space<vmem>>, vector<2x256xf32>
    %c51 = arith.constant 51 : index
    %208 = memref.load %arg3[%c51] : memref<98xf32, #tpu.memory_space<smem>>
    %209 = vector.broadcast %208 : f32 to vector<2x256xf32>
    %210 = arith.mulf %209, %207 : vector<2x256xf32>
    %211 = arith.addf %201, %210 : vector<2x256xf32>
    %c0_82 = arith.constant 0 : index
    %c95_83 = arith.constant 95 : index
    %212 = vector.load %arg6[%c0_82, %c95_83] : memref<2x512xf32, #tpu.memory_space<vmem>>, vector<2x256xf32>
    %c58 = arith.constant 58 : index
    %213 = memref.load %arg3[%c58] : memref<98xf32, #tpu.memory_space<smem>>
    %214 = vector.broadcast %213 : f32 to vector<2x256xf32>
    %215 = arith.mulf %214, %212 : vector<2x256xf32>
    %216 = arith.addf %206, %215 : vector<2x256xf32>
    %c0_84 = arith.constant 0 : index
    %c111_85 = arith.constant 111 : index
    %217 = vector.load %arg6[%c0_84, %c111_85] : memref<2x512xf32, #tpu.memory_space<vmem>>, vector<2x256xf32>
    %c65 = arith.constant 65 : index
    %218 = memref.load %arg3[%c65] : memref<98xf32, #tpu.memory_space<smem>>
    %219 = vector.broadcast %218 : f32 to vector<2x256xf32>
    %220 = arith.mulf %219, %217 : vector<2x256xf32>
    %221 = arith.addf %211, %220 : vector<2x256xf32>
    %c0_86 = arith.constant 0 : index
    %c127_87 = arith.constant 127 : index
    %222 = vector.load %arg6[%c0_86, %c127_87] : memref<2x512xf32, #tpu.memory_space<vmem>>, vector<2x256xf32>
    %c72 = arith.constant 72 : index
    %223 = memref.load %arg3[%c72] : memref<98xf32, #tpu.memory_space<smem>>
    %224 = vector.broadcast %223 : f32 to vector<2x256xf32>
    %225 = arith.mulf %224, %222 : vector<2x256xf32>
    %226 = arith.addf %216, %225 : vector<2x256xf32>
    %c0_88 = arith.constant 0 : index
    %c143_89 = arith.constant 143 : index
    %227 = vector.load %arg6[%c0_88, %c143_89] : memref<2x512xf32, #tpu.memory_space<vmem>>, vector<2x256xf32>
    %c79_90 = arith.constant 79 : index
    %228 = memref.load %arg3[%c79_90] : memref<98xf32, #tpu.memory_space<smem>>
    %229 = vector.broadcast %228 : f32 to vector<2x256xf32>
    %230 = arith.mulf %229, %227 : vector<2x256xf32>
    %231 = arith.addf %221, %230 : vector<2x256xf32>
    %c0_91 = arith.constant 0 : index
    %c159_92 = arith.constant 159 : index
    %232 = vector.load %arg6[%c0_91, %c159_92] : memref<2x512xf32, #tpu.memory_space<vmem>>, vector<2x256xf32>
    %c86 = arith.constant 86 : index
    %233 = memref.load %arg3[%c86] : memref<98xf32, #tpu.memory_space<smem>>
    %234 = vector.broadcast %233 : f32 to vector<2x256xf32>
    %235 = arith.mulf %234, %232 : vector<2x256xf32>
    %236 = arith.addf %226, %235 : vector<2x256xf32>
    %c0_93 = arith.constant 0 : index
    %c175_94 = arith.constant 175 : index
    %237 = vector.load %arg6[%c0_93, %c175_94] : memref<2x512xf32, #tpu.memory_space<vmem>>, vector<2x256xf32>
    %c93_95 = arith.constant 93 : index
    %238 = memref.load %arg3[%c93_95] : memref<98xf32, #tpu.memory_space<smem>>
    %239 = vector.broadcast %238 : f32 to vector<2x256xf32>
    %240 = arith.mulf %239, %237 : vector<2x256xf32>
    %241 = arith.addf %231, %240 : vector<2x256xf32>
    %c2_96 = arith.constant 2 : index
    %c0_97 = arith.constant 0 : index
    %242 = vector.load %arg2[%c2_96, %c0_97] : memref<7x256xf32, #tpu.memory_space<vmem>>, vector<1x256xf32>
    %243 = arith.addf %236, %241 : vector<2x256xf32>
    %244 = vector.broadcast %242 : vector<1x256xf32> to vector<2x256xf32>
    %245 = arith.mulf %243, %244 : vector<2x256xf32>
    %246 = arith.addf %92, %245 : vector<2x256xf32>
    %cst_98 = arith.constant 0.000000e+00 : f32
    %247 = vector.broadcast %cst_98 : f32 to vector<2x256xf32>
    %cst_99 = arith.constant 0.000000e+00 : f32
    %248 = vector.broadcast %cst_99 : f32 to vector<2x256xf32>
    %c0_100 = arith.constant 0 : index
    %c80 = arith.constant 80 : index
    %249 = vector.load %arg5[%c0_100, %c80] : memref<2x512xf32, #tpu.memory_space<vmem>>, vector<2x256xf32>
    %c3 = arith.constant 3 : index
    %250 = memref.load %arg3[%c3] : memref<98xf32, #tpu.memory_space<smem>>
    %251 = vector.broadcast %250 : f32 to vector<2x256xf32>
    %252 = arith.mulf %251, %249 : vector<2x256xf32>
    %253 = arith.addf %247, %252 : vector<2x256xf32>
    %c0_101 = arith.constant 0 : index
    %c96 = arith.constant 96 : index
    %254 = vector.load %arg5[%c0_101, %c96] : memref<2x512xf32, #tpu.memory_space<vmem>>, vector<2x256xf32>
    %c10 = arith.constant 10 : index
    %255 = memref.load %arg3[%c10] : memref<98xf32, #tpu.memory_space<smem>>
    %256 = vector.broadcast %255 : f32 to vector<2x256xf32>
    %257 = arith.mulf %256, %254 : vector<2x256xf32>
    %258 = arith.addf %248, %257 : vector<2x256xf32>
    %c0_102 = arith.constant 0 : index
    %c112 = arith.constant 112 : index
    %259 = vector.load %arg5[%c0_102, %c112] : memref<2x512xf32, #tpu.memory_space<vmem>>, vector<2x256xf32>
    %c17 = arith.constant 17 : index
    %260 = memref.load %arg3[%c17] : memref<98xf32, #tpu.memory_space<smem>>
    %261 = vector.broadcast %260 : f32 to vector<2x256xf32>
    %262 = arith.mulf %261, %259 : vector<2x256xf32>
    %263 = arith.addf %253, %262 : vector<2x256xf32>
    %c0_103 = arith.constant 0 : index
    %c128_104 = arith.constant 128 : index
    %264 = vector.load %arg5[%c0_103, %c128_104] : memref<2x512xf32, #tpu.memory_space<vmem>>, vector<2x256xf32>
    %c24 = arith.constant 24 : index
    %265 = memref.load %arg3[%c24] : memref<98xf32, #tpu.memory_space<smem>>
    %266 = vector.broadcast %265 : f32 to vector<2x256xf32>
    %267 = arith.mulf %266, %264 : vector<2x256xf32>
    %268 = arith.addf %258, %267 : vector<2x256xf32>
    %c0_105 = arith.constant 0 : index
    %c144 = arith.constant 144 : index
    %269 = vector.load %arg5[%c0_105, %c144] : memref<2x512xf32, #tpu.memory_space<vmem>>, vector<2x256xf32>
    %c31 = arith.constant 31 : index
    %270 = memref.load %arg3[%c31] : memref<98xf32, #tpu.memory_space<smem>>
    %271 = vector.broadcast %270 : f32 to vector<2x256xf32>
    %272 = arith.mulf %271, %269 : vector<2x256xf32>
    %273 = arith.addf %263, %272 : vector<2x256xf32>
    %c0_106 = arith.constant 0 : index
    %c160 = arith.constant 160 : index
    %274 = vector.load %arg5[%c0_106, %c160] : memref<2x512xf32, #tpu.memory_space<vmem>>, vector<2x256xf32>
    %c38 = arith.constant 38 : index
    %275 = memref.load %arg3[%c38] : memref<98xf32, #tpu.memory_space<smem>>
    %276 = vector.broadcast %275 : f32 to vector<2x256xf32>
    %277 = arith.mulf %276, %274 : vector<2x256xf32>
    %278 = arith.addf %268, %277 : vector<2x256xf32>
    %c0_107 = arith.constant 0 : index
    %c176 = arith.constant 176 : index
    %279 = vector.load %arg5[%c0_107, %c176] : memref<2x512xf32, #tpu.memory_space<vmem>>, vector<2x256xf32>
    %c45 = arith.constant 45 : index
    %280 = memref.load %arg3[%c45] : memref<98xf32, #tpu.memory_space<smem>>
    %281 = vector.broadcast %280 : f32 to vector<2x256xf32>
    %282 = arith.mulf %281, %279 : vector<2x256xf32>
    %283 = arith.addf %273, %282 : vector<2x256xf32>
    %c0_108 = arith.constant 0 : index
    %c80_109 = arith.constant 80 : index
    %284 = vector.load %arg6[%c0_108, %c80_109] : memref<2x512xf32, #tpu.memory_space<vmem>>, vector<2x256xf32>
    %c52 = arith.constant 52 : index
    %285 = memref.load %arg3[%c52] : memref<98xf32, #tpu.memory_space<smem>>
    %286 = vector.broadcast %285 : f32 to vector<2x256xf32>
    %287 = arith.mulf %286, %284 : vector<2x256xf32>
    %288 = arith.addf %278, %287 : vector<2x256xf32>
    %c0_110 = arith.constant 0 : index
    %c96_111 = arith.constant 96 : index
    %289 = vector.load %arg6[%c0_110, %c96_111] : memref<2x512xf32, #tpu.memory_space<vmem>>, vector<2x256xf32>
    %c59 = arith.constant 59 : index
    %290 = memref.load %arg3[%c59] : memref<98xf32, #tpu.memory_space<smem>>
    %291 = vector.broadcast %290 : f32 to vector<2x256xf32>
    %292 = arith.mulf %291, %289 : vector<2x256xf32>
    %293 = arith.addf %283, %292 : vector<2x256xf32>
    %c0_112 = arith.constant 0 : index
    %c112_113 = arith.constant 112 : index
    %294 = vector.load %arg6[%c0_112, %c112_113] : memref<2x512xf32, #tpu.memory_space<vmem>>, vector<2x256xf32>
    %c66 = arith.constant 66 : index
    %295 = memref.load %arg3[%c66] : memref<98xf32, #tpu.memory_space<smem>>
    %296 = vector.broadcast %295 : f32 to vector<2x256xf32>
    %297 = arith.mulf %296, %294 : vector<2x256xf32>
    %298 = arith.addf %288, %297 : vector<2x256xf32>
    %c0_114 = arith.constant 0 : index
    %c128_115 = arith.constant 128 : index
    %299 = vector.load %arg6[%c0_114, %c128_115] : memref<2x512xf32, #tpu.memory_space<vmem>>, vector<2x256xf32>
    %c73 = arith.constant 73 : index
    %300 = memref.load %arg3[%c73] : memref<98xf32, #tpu.memory_space<smem>>
    %301 = vector.broadcast %300 : f32 to vector<2x256xf32>
    %302 = arith.mulf %301, %299 : vector<2x256xf32>
    %303 = arith.addf %293, %302 : vector<2x256xf32>
    %c0_116 = arith.constant 0 : index
    %c144_117 = arith.constant 144 : index
    %304 = vector.load %arg6[%c0_116, %c144_117] : memref<2x512xf32, #tpu.memory_space<vmem>>, vector<2x256xf32>
    %c80_118 = arith.constant 80 : index
    %305 = memref.load %arg3[%c80_118] : memref<98xf32, #tpu.memory_space<smem>>
    %306 = vector.broadcast %305 : f32 to vector<2x256xf32>
    %307 = arith.mulf %306, %304 : vector<2x256xf32>
    %308 = arith.addf %298, %307 : vector<2x256xf32>
    %c0_119 = arith.constant 0 : index
    %c160_120 = arith.constant 160 : index
    %309 = vector.load %arg6[%c0_119, %c160_120] : memref<2x512xf32, #tpu.memory_space<vmem>>, vector<2x256xf32>
    %c87 = arith.constant 87 : index
    %310 = memref.load %arg3[%c87] : memref<98xf32, #tpu.memory_space<smem>>
    %311 = vector.broadcast %310 : f32 to vector<2x256xf32>
    %312 = arith.mulf %311, %309 : vector<2x256xf32>
    %313 = arith.addf %303, %312 : vector<2x256xf32>
    %c0_121 = arith.constant 0 : index
    %c176_122 = arith.constant 176 : index
    %314 = vector.load %arg6[%c0_121, %c176_122] : memref<2x512xf32, #tpu.memory_space<vmem>>, vector<2x256xf32>
    %c94_123 = arith.constant 94 : index
    %315 = memref.load %arg3[%c94_123] : memref<98xf32, #tpu.memory_space<smem>>
    %316 = vector.broadcast %315 : f32 to vector<2x256xf32>
    %317 = arith.mulf %316, %314 : vector<2x256xf32>
    %318 = arith.addf %308, %317 : vector<2x256xf32>
    %c3_124 = arith.constant 3 : index
    %c0_125 = arith.constant 0 : index
    %319 = vector.load %arg2[%c3_124, %c0_125] : memref<7x256xf32, #tpu.memory_space<vmem>>, vector<1x256xf32>
    %320 = arith.addf %313, %318 : vector<2x256xf32>
    %321 = vector.broadcast %319 : vector<1x256xf32> to vector<2x256xf32>
    %322 = arith.mulf %320, %321 : vector<2x256xf32>
    %323 = arith.addf %169, %322 : vector<2x256xf32>
    %cst_126 = arith.constant 0.000000e+00 : f32
    %324 = vector.broadcast %cst_126 : f32 to vector<2x256xf32>
    %cst_127 = arith.constant 0.000000e+00 : f32
    %325 = vector.broadcast %cst_127 : f32 to vector<2x256xf32>
    %c0_128 = arith.constant 0 : index
    %c81 = arith.constant 81 : index
    %326 = vector.load %arg5[%c0_128, %c81] : memref<2x512xf32, #tpu.memory_space<vmem>>, vector<2x256xf32>
    %c4 = arith.constant 4 : index
    %327 = memref.load %arg3[%c4] : memref<98xf32, #tpu.memory_space<smem>>
    %328 = vector.broadcast %327 : f32 to vector<2x256xf32>
    %329 = arith.mulf %328, %326 : vector<2x256xf32>
    %330 = arith.addf %324, %329 : vector<2x256xf32>
    %c0_129 = arith.constant 0 : index
    %c97 = arith.constant 97 : index
    %331 = vector.load %arg5[%c0_129, %c97] : memref<2x512xf32, #tpu.memory_space<vmem>>, vector<2x256xf32>
    %c11 = arith.constant 11 : index
    %332 = memref.load %arg3[%c11] : memref<98xf32, #tpu.memory_space<smem>>
    %333 = vector.broadcast %332 : f32 to vector<2x256xf32>
    %334 = arith.mulf %333, %331 : vector<2x256xf32>
    %335 = arith.addf %325, %334 : vector<2x256xf32>
    %c0_130 = arith.constant 0 : index
    %c113 = arith.constant 113 : index
    %336 = vector.load %arg5[%c0_130, %c113] : memref<2x512xf32, #tpu.memory_space<vmem>>, vector<2x256xf32>
    %c18 = arith.constant 18 : index
    %337 = memref.load %arg3[%c18] : memref<98xf32, #tpu.memory_space<smem>>
    %338 = vector.broadcast %337 : f32 to vector<2x256xf32>
    %339 = arith.mulf %338, %336 : vector<2x256xf32>
    %340 = arith.addf %330, %339 : vector<2x256xf32>
    %c0_131 = arith.constant 0 : index
    %c129 = arith.constant 129 : index
    %341 = vector.load %arg5[%c0_131, %c129] : memref<2x512xf32, #tpu.memory_space<vmem>>, vector<2x256xf32>
    %c25 = arith.constant 25 : index
    %342 = memref.load %arg3[%c25] : memref<98xf32, #tpu.memory_space<smem>>
    %343 = vector.broadcast %342 : f32 to vector<2x256xf32>
    %344 = arith.mulf %343, %341 : vector<2x256xf32>
    %345 = arith.addf %335, %344 : vector<2x256xf32>
    %c0_132 = arith.constant 0 : index
    %c145 = arith.constant 145 : index
    %346 = vector.load %arg5[%c0_132, %c145] : memref<2x512xf32, #tpu.memory_space<vmem>>, vector<2x256xf32>
    %c32 = arith.constant 32 : index
    %347 = memref.load %arg3[%c32] : memref<98xf32, #tpu.memory_space<smem>>
    %348 = vector.broadcast %347 : f32 to vector<2x256xf32>
    %349 = arith.mulf %348, %346 : vector<2x256xf32>
    %350 = arith.addf %340, %349 : vector<2x256xf32>
    %c0_133 = arith.constant 0 : index
    %c161 = arith.constant 161 : index
    %351 = vector.load %arg5[%c0_133, %c161] : memref<2x512xf32, #tpu.memory_space<vmem>>, vector<2x256xf32>
    %c39 = arith.constant 39 : index
    %352 = memref.load %arg3[%c39] : memref<98xf32, #tpu.memory_space<smem>>
    %353 = vector.broadcast %352 : f32 to vector<2x256xf32>
    %354 = arith.mulf %353, %351 : vector<2x256xf32>
    %355 = arith.addf %345, %354 : vector<2x256xf32>
    %c0_134 = arith.constant 0 : index
    %c177 = arith.constant 177 : index
    %356 = vector.load %arg5[%c0_134, %c177] : memref<2x512xf32, #tpu.memory_space<vmem>>, vector<2x256xf32>
    %c46 = arith.constant 46 : index
    %357 = memref.load %arg3[%c46] : memref<98xf32, #tpu.memory_space<smem>>
    %358 = vector.broadcast %357 : f32 to vector<2x256xf32>
    %359 = arith.mulf %358, %356 : vector<2x256xf32>
    %360 = arith.addf %350, %359 : vector<2x256xf32>
    %c0_135 = arith.constant 0 : index
    %c81_136 = arith.constant 81 : index
    %361 = vector.load %arg6[%c0_135, %c81_136] : memref<2x512xf32, #tpu.memory_space<vmem>>, vector<2x256xf32>
    %c53 = arith.constant 53 : index
    %362 = memref.load %arg3[%c53] : memref<98xf32, #tpu.memory_space<smem>>
    %363 = vector.broadcast %362 : f32 to vector<2x256xf32>
    %364 = arith.mulf %363, %361 : vector<2x256xf32>
    %365 = arith.addf %355, %364 : vector<2x256xf32>
    %c0_137 = arith.constant 0 : index
    %c97_138 = arith.constant 97 : index
    %366 = vector.load %arg6[%c0_137, %c97_138] : memref<2x512xf32, #tpu.memory_space<vmem>>, vector<2x256xf32>
    %c60 = arith.constant 60 : index
    %367 = memref.load %arg3[%c60] : memref<98xf32, #tpu.memory_space<smem>>
    %368 = vector.broadcast %367 : f32 to vector<2x256xf32>
    %369 = arith.mulf %368, %366 : vector<2x256xf32>
    %370 = arith.addf %360, %369 : vector<2x256xf32>
    %c0_139 = arith.constant 0 : index
    %c113_140 = arith.constant 113 : index
    %371 = vector.load %arg6[%c0_139, %c113_140] : memref<2x512xf32, #tpu.memory_space<vmem>>, vector<2x256xf32>
    %c67 = arith.constant 67 : index
    %372 = memref.load %arg3[%c67] : memref<98xf32, #tpu.memory_space<smem>>
    %373 = vector.broadcast %372 : f32 to vector<2x256xf32>
    %374 = arith.mulf %373, %371 : vector<2x256xf32>
    %375 = arith.addf %365, %374 : vector<2x256xf32>
    %c0_141 = arith.constant 0 : index
    %c129_142 = arith.constant 129 : index
    %376 = vector.load %arg6[%c0_141, %c129_142] : memref<2x512xf32, #tpu.memory_space<vmem>>, vector<2x256xf32>
    %c74 = arith.constant 74 : index
    %377 = memref.load %arg3[%c74] : memref<98xf32, #tpu.memory_space<smem>>
    %378 = vector.broadcast %377 : f32 to vector<2x256xf32>
    %379 = arith.mulf %378, %376 : vector<2x256xf32>
    %380 = arith.addf %370, %379 : vector<2x256xf32>
    %c0_143 = arith.constant 0 : index
    %c145_144 = arith.constant 145 : index
    %381 = vector.load %arg6[%c0_143, %c145_144] : memref<2x512xf32, #tpu.memory_space<vmem>>, vector<2x256xf32>
    %c81_145 = arith.constant 81 : index
    %382 = memref.load %arg3[%c81_145] : memref<98xf32, #tpu.memory_space<smem>>
    %383 = vector.broadcast %382 : f32 to vector<2x256xf32>
    %384 = arith.mulf %383, %381 : vector<2x256xf32>
    %385 = arith.addf %375, %384 : vector<2x256xf32>
    %c0_146 = arith.constant 0 : index
    %c161_147 = arith.constant 161 : index
    %386 = vector.load %arg6[%c0_146, %c161_147] : memref<2x512xf32, #tpu.memory_space<vmem>>, vector<2x256xf32>
    %c88 = arith.constant 88 : index
    %387 = memref.load %arg3[%c88] : memref<98xf32, #tpu.memory_space<smem>>
    %388 = vector.broadcast %387 : f32 to vector<2x256xf32>
    %389 = arith.mulf %388, %386 : vector<2x256xf32>
    %390 = arith.addf %380, %389 : vector<2x256xf32>
    %c0_148 = arith.constant 0 : index
    %c177_149 = arith.constant 177 : index
    %391 = vector.load %arg6[%c0_148, %c177_149] : memref<2x512xf32, #tpu.memory_space<vmem>>, vector<2x256xf32>
    %c95_150 = arith.constant 95 : index
    %392 = memref.load %arg3[%c95_150] : memref<98xf32, #tpu.memory_space<smem>>
    %393 = vector.broadcast %392 : f32 to vector<2x256xf32>
    %394 = arith.mulf %393, %391 : vector<2x256xf32>
    %395 = arith.addf %385, %394 : vector<2x256xf32>
    %c4_151 = arith.constant 4 : index
    %c0_152 = arith.constant 0 : index
    %396 = vector.load %arg2[%c4_151, %c0_152] : memref<7x256xf32, #tpu.memory_space<vmem>>, vector<1x256xf32>
    %397 = arith.addf %390, %395 : vector<2x256xf32>
    %398 = vector.broadcast %396 : vector<1x256xf32> to vector<2x256xf32>
    %399 = arith.mulf %397, %398 : vector<2x256xf32>
    %400 = arith.addf %246, %399 : vector<2x256xf32>
    %cst_153 = arith.constant 0.000000e+00 : f32
    %401 = vector.broadcast %cst_153 : f32 to vector<2x256xf32>
    %cst_154 = arith.constant 0.000000e+00 : f32
    %402 = vector.broadcast %cst_154 : f32 to vector<2x256xf32>
    %c0_155 = arith.constant 0 : index
    %c82 = arith.constant 82 : index
    %403 = vector.load %arg5[%c0_155, %c82] : memref<2x512xf32, #tpu.memory_space<vmem>>, vector<2x256xf32>
    %c5 = arith.constant 5 : index
    %404 = memref.load %arg3[%c5] : memref<98xf32, #tpu.memory_space<smem>>
    %405 = vector.broadcast %404 : f32 to vector<2x256xf32>
    %406 = arith.mulf %405, %403 : vector<2x256xf32>
    %407 = arith.addf %401, %406 : vector<2x256xf32>
    %c0_156 = arith.constant 0 : index
    %c98 = arith.constant 98 : index
    %408 = vector.load %arg5[%c0_156, %c98] : memref<2x512xf32, #tpu.memory_space<vmem>>, vector<2x256xf32>
    %c12 = arith.constant 12 : index
    %409 = memref.load %arg3[%c12] : memref<98xf32, #tpu.memory_space<smem>>
    %410 = vector.broadcast %409 : f32 to vector<2x256xf32>
    %411 = arith.mulf %410, %408 : vector<2x256xf32>
    %412 = arith.addf %402, %411 : vector<2x256xf32>
    %c0_157 = arith.constant 0 : index
    %c114 = arith.constant 114 : index
    %413 = vector.load %arg5[%c0_157, %c114] : memref<2x512xf32, #tpu.memory_space<vmem>>, vector<2x256xf32>
    %c19 = arith.constant 19 : index
    %414 = memref.load %arg3[%c19] : memref<98xf32, #tpu.memory_space<smem>>
    %415 = vector.broadcast %414 : f32 to vector<2x256xf32>
    %416 = arith.mulf %415, %413 : vector<2x256xf32>
    %417 = arith.addf %407, %416 : vector<2x256xf32>
    %c0_158 = arith.constant 0 : index
    %c130 = arith.constant 130 : index
    %418 = vector.load %arg5[%c0_158, %c130] : memref<2x512xf32, #tpu.memory_space<vmem>>, vector<2x256xf32>
    %c26 = arith.constant 26 : index
    %419 = memref.load %arg3[%c26] : memref<98xf32, #tpu.memory_space<smem>>
    %420 = vector.broadcast %419 : f32 to vector<2x256xf32>
    %421 = arith.mulf %420, %418 : vector<2x256xf32>
    %422 = arith.addf %412, %421 : vector<2x256xf32>
    %c0_159 = arith.constant 0 : index
    %c146 = arith.constant 146 : index
    %423 = vector.load %arg5[%c0_159, %c146] : memref<2x512xf32, #tpu.memory_space<vmem>>, vector<2x256xf32>
    %c33 = arith.constant 33 : index
    %424 = memref.load %arg3[%c33] : memref<98xf32, #tpu.memory_space<smem>>
    %425 = vector.broadcast %424 : f32 to vector<2x256xf32>
    %426 = arith.mulf %425, %423 : vector<2x256xf32>
    %427 = arith.addf %417, %426 : vector<2x256xf32>
    %c0_160 = arith.constant 0 : index
    %c162 = arith.constant 162 : index
    %428 = vector.load %arg5[%c0_160, %c162] : memref<2x512xf32, #tpu.memory_space<vmem>>, vector<2x256xf32>
    %c40 = arith.constant 40 : index
    %429 = memref.load %arg3[%c40] : memref<98xf32, #tpu.memory_space<smem>>
    %430 = vector.broadcast %429 : f32 to vector<2x256xf32>
    %431 = arith.mulf %430, %428 : vector<2x256xf32>
    %432 = arith.addf %422, %431 : vector<2x256xf32>
    %c0_161 = arith.constant 0 : index
    %c178 = arith.constant 178 : index
    %433 = vector.load %arg5[%c0_161, %c178] : memref<2x512xf32, #tpu.memory_space<vmem>>, vector<2x256xf32>
    %c47 = arith.constant 47 : index
    %434 = memref.load %arg3[%c47] : memref<98xf32, #tpu.memory_space<smem>>
    %435 = vector.broadcast %434 : f32 to vector<2x256xf32>
    %436 = arith.mulf %435, %433 : vector<2x256xf32>
    %437 = arith.addf %427, %436 : vector<2x256xf32>
    %c0_162 = arith.constant 0 : index
    %c82_163 = arith.constant 82 : index
    %438 = vector.load %arg6[%c0_162, %c82_163] : memref<2x512xf32, #tpu.memory_space<vmem>>, vector<2x256xf32>
    %c54 = arith.constant 54 : index
    %439 = memref.load %arg3[%c54] : memref<98xf32, #tpu.memory_space<smem>>
    %440 = vector.broadcast %439 : f32 to vector<2x256xf32>
    %441 = arith.mulf %440, %438 : vector<2x256xf32>
    %442 = arith.addf %432, %441 : vector<2x256xf32>
    %c0_164 = arith.constant 0 : index
    %c98_165 = arith.constant 98 : index
    %443 = vector.load %arg6[%c0_164, %c98_165] : memref<2x512xf32, #tpu.memory_space<vmem>>, vector<2x256xf32>
    %c61 = arith.constant 61 : index
    %444 = memref.load %arg3[%c61] : memref<98xf32, #tpu.memory_space<smem>>
    %445 = vector.broadcast %444 : f32 to vector<2x256xf32>
    %446 = arith.mulf %445, %443 : vector<2x256xf32>
    %447 = arith.addf %437, %446 : vector<2x256xf32>
    %c0_166 = arith.constant 0 : index
    %c114_167 = arith.constant 114 : index
    %448 = vector.load %arg6[%c0_166, %c114_167] : memref<2x512xf32, #tpu.memory_space<vmem>>, vector<2x256xf32>
    %c68 = arith.constant 68 : index
    %449 = memref.load %arg3[%c68] : memref<98xf32, #tpu.memory_space<smem>>
    %450 = vector.broadcast %449 : f32 to vector<2x256xf32>
    %451 = arith.mulf %450, %448 : vector<2x256xf32>
    %452 = arith.addf %442, %451 : vector<2x256xf32>
    %c0_168 = arith.constant 0 : index
    %c130_169 = arith.constant 130 : index
    %453 = vector.load %arg6[%c0_168, %c130_169] : memref<2x512xf32, #tpu.memory_space<vmem>>, vector<2x256xf32>
    %c75 = arith.constant 75 : index
    %454 = memref.load %arg3[%c75] : memref<98xf32, #tpu.memory_space<smem>>
    %455 = vector.broadcast %454 : f32 to vector<2x256xf32>
    %456 = arith.mulf %455, %453 : vector<2x256xf32>
    %457 = arith.addf %447, %456 : vector<2x256xf32>
    %c0_170 = arith.constant 0 : index
    %c146_171 = arith.constant 146 : index
    %458 = vector.load %arg6[%c0_170, %c146_171] : memref<2x512xf32, #tpu.memory_space<vmem>>, vector<2x256xf32>
    %c82_172 = arith.constant 82 : index
    %459 = memref.load %arg3[%c82_172] : memref<98xf32, #tpu.memory_space<smem>>
    %460 = vector.broadcast %459 : f32 to vector<2x256xf32>
    %461 = arith.mulf %460, %458 : vector<2x256xf32>
    %462 = arith.addf %452, %461 : vector<2x256xf32>
    %c0_173 = arith.constant 0 : index
    %c162_174 = arith.constant 162 : index
    %463 = vector.load %arg6[%c0_173, %c162_174] : memref<2x512xf32, #tpu.memory_space<vmem>>, vector<2x256xf32>
    %c89 = arith.constant 89 : index
    %464 = memref.load %arg3[%c89] : memref<98xf32, #tpu.memory_space<smem>>
    %465 = vector.broadcast %464 : f32 to vector<2x256xf32>
    %466 = arith.mulf %465, %463 : vector<2x256xf32>
    %467 = arith.addf %457, %466 : vector<2x256xf32>
    %c0_175 = arith.constant 0 : index
    %c178_176 = arith.constant 178 : index
    %468 = vector.load %arg6[%c0_175, %c178_176] : memref<2x512xf32, #tpu.memory_space<vmem>>, vector<2x256xf32>
    %c96_177 = arith.constant 96 : index
    %469 = memref.load %arg3[%c96_177] : memref<98xf32, #tpu.memory_space<smem>>
    %470 = vector.broadcast %469 : f32 to vector<2x256xf32>
    %471 = arith.mulf %470, %468 : vector<2x256xf32>
    %472 = arith.addf %462, %471 : vector<2x256xf32>
    %c5_178 = arith.constant 5 : index
    %c0_179 = arith.constant 0 : index
    %473 = vector.load %arg2[%c5_178, %c0_179] : memref<7x256xf32, #tpu.memory_space<vmem>>, vector<1x256xf32>
    %474 = arith.addf %467, %472 : vector<2x256xf32>
    %475 = vector.broadcast %473 : vector<1x256xf32> to vector<2x256xf32>
    %476 = arith.mulf %474, %475 : vector<2x256xf32>
    %477 = arith.addf %323, %476 : vector<2x256xf32>
    %cst_180 = arith.constant 0.000000e+00 : f32
    %478 = vector.broadcast %cst_180 : f32 to vector<2x256xf32>
    %cst_181 = arith.constant 0.000000e+00 : f32
    %479 = vector.broadcast %cst_181 : f32 to vector<2x256xf32>
    %c0_182 = arith.constant 0 : index
    %c83 = arith.constant 83 : index
    %480 = vector.load %arg5[%c0_182, %c83] : memref<2x512xf32, #tpu.memory_space<vmem>>, vector<2x256xf32>
    %c6 = arith.constant 6 : index
    %481 = memref.load %arg3[%c6] : memref<98xf32, #tpu.memory_space<smem>>
    %482 = vector.broadcast %481 : f32 to vector<2x256xf32>
    %483 = arith.mulf %482, %480 : vector<2x256xf32>
    %484 = arith.addf %478, %483 : vector<2x256xf32>
    %c0_183 = arith.constant 0 : index
    %c99 = arith.constant 99 : index
    %485 = vector.load %arg5[%c0_183, %c99] : memref<2x512xf32, #tpu.memory_space<vmem>>, vector<2x256xf32>
    %c13 = arith.constant 13 : index
    %486 = memref.load %arg3[%c13] : memref<98xf32, #tpu.memory_space<smem>>
    %487 = vector.broadcast %486 : f32 to vector<2x256xf32>
    %488 = arith.mulf %487, %485 : vector<2x256xf32>
    %489 = arith.addf %479, %488 : vector<2x256xf32>
    %c0_184 = arith.constant 0 : index
    %c115 = arith.constant 115 : index
    %490 = vector.load %arg5[%c0_184, %c115] : memref<2x512xf32, #tpu.memory_space<vmem>>, vector<2x256xf32>
    %c20 = arith.constant 20 : index
    %491 = memref.load %arg3[%c20] : memref<98xf32, #tpu.memory_space<smem>>
    %492 = vector.broadcast %491 : f32 to vector<2x256xf32>
    %493 = arith.mulf %492, %490 : vector<2x256xf32>
    %494 = arith.addf %484, %493 : vector<2x256xf32>
    %c0_185 = arith.constant 0 : index
    %c131 = arith.constant 131 : index
    %495 = vector.load %arg5[%c0_185, %c131] : memref<2x512xf32, #tpu.memory_space<vmem>>, vector<2x256xf32>
    %c27 = arith.constant 27 : index
    %496 = memref.load %arg3[%c27] : memref<98xf32, #tpu.memory_space<smem>>
    %497 = vector.broadcast %496 : f32 to vector<2x256xf32>
    %498 = arith.mulf %497, %495 : vector<2x256xf32>
    %499 = arith.addf %489, %498 : vector<2x256xf32>
    %c0_186 = arith.constant 0 : index
    %c147 = arith.constant 147 : index
    %500 = vector.load %arg5[%c0_186, %c147] : memref<2x512xf32, #tpu.memory_space<vmem>>, vector<2x256xf32>
    %c34 = arith.constant 34 : index
    %501 = memref.load %arg3[%c34] : memref<98xf32, #tpu.memory_space<smem>>
    %502 = vector.broadcast %501 : f32 to vector<2x256xf32>
    %503 = arith.mulf %502, %500 : vector<2x256xf32>
    %504 = arith.addf %494, %503 : vector<2x256xf32>
    %c0_187 = arith.constant 0 : index
    %c163 = arith.constant 163 : index
    %505 = vector.load %arg5[%c0_187, %c163] : memref<2x512xf32, #tpu.memory_space<vmem>>, vector<2x256xf32>
    %c41 = arith.constant 41 : index
    %506 = memref.load %arg3[%c41] : memref<98xf32, #tpu.memory_space<smem>>
    %507 = vector.broadcast %506 : f32 to vector<2x256xf32>
    %508 = arith.mulf %507, %505 : vector<2x256xf32>
    %509 = arith.addf %499, %508 : vector<2x256xf32>
    %c0_188 = arith.constant 0 : index
    %c179 = arith.constant 179 : index
    %510 = vector.load %arg5[%c0_188, %c179] : memref<2x512xf32, #tpu.memory_space<vmem>>, vector<2x256xf32>
    %c48 = arith.constant 48 : index
    %511 = memref.load %arg3[%c48] : memref<98xf32, #tpu.memory_space<smem>>
    %512 = vector.broadcast %511 : f32 to vector<2x256xf32>
    %513 = arith.mulf %512, %510 : vector<2x256xf32>
    %514 = arith.addf %504, %513 : vector<2x256xf32>
    %c0_189 = arith.constant 0 : index
    %c83_190 = arith.constant 83 : index
    %515 = vector.load %arg6[%c0_189, %c83_190] : memref<2x512xf32, #tpu.memory_space<vmem>>, vector<2x256xf32>
    %c55 = arith.constant 55 : index
    %516 = memref.load %arg3[%c55] : memref<98xf32, #tpu.memory_space<smem>>
    %517 = vector.broadcast %516 : f32 to vector<2x256xf32>
    %518 = arith.mulf %517, %515 : vector<2x256xf32>
    %519 = arith.addf %509, %518 : vector<2x256xf32>
    %c0_191 = arith.constant 0 : index
    %c99_192 = arith.constant 99 : index
    %520 = vector.load %arg6[%c0_191, %c99_192] : memref<2x512xf32, #tpu.memory_space<vmem>>, vector<2x256xf32>
    %c62 = arith.constant 62 : index
    %521 = memref.load %arg3[%c62] : memref<98xf32, #tpu.memory_space<smem>>
    %522 = vector.broadcast %521 : f32 to vector<2x256xf32>
    %523 = arith.mulf %522, %520 : vector<2x256xf32>
    %524 = arith.addf %514, %523 : vector<2x256xf32>
    %c0_193 = arith.constant 0 : index
    %c115_194 = arith.constant 115 : index
    %525 = vector.load %arg6[%c0_193, %c115_194] : memref<2x512xf32, #tpu.memory_space<vmem>>, vector<2x256xf32>
    %c69 = arith.constant 69 : index
    %526 = memref.load %arg3[%c69] : memref<98xf32, #tpu.memory_space<smem>>
    %527 = vector.broadcast %526 : f32 to vector<2x256xf32>
    %528 = arith.mulf %527, %525 : vector<2x256xf32>
    %529 = arith.addf %519, %528 : vector<2x256xf32>
    %c0_195 = arith.constant 0 : index
    %c131_196 = arith.constant 131 : index
    %530 = vector.load %arg6[%c0_195, %c131_196] : memref<2x512xf32, #tpu.memory_space<vmem>>, vector<2x256xf32>
    %c76 = arith.constant 76 : index
    %531 = memref.load %arg3[%c76] : memref<98xf32, #tpu.memory_space<smem>>
    %532 = vector.broadcast %531 : f32 to vector<2x256xf32>
    %533 = arith.mulf %532, %530 : vector<2x256xf32>
    %534 = arith.addf %524, %533 : vector<2x256xf32>
    %c0_197 = arith.constant 0 : index
    %c147_198 = arith.constant 147 : index
    %535 = vector.load %arg6[%c0_197, %c147_198] : memref<2x512xf32, #tpu.memory_space<vmem>>, vector<2x256xf32>
    %c83_199 = arith.constant 83 : index
    %536 = memref.load %arg3[%c83_199] : memref<98xf32, #tpu.memory_space<smem>>
    %537 = vector.broadcast %536 : f32 to vector<2x256xf32>
    %538 = arith.mulf %537, %535 : vector<2x256xf32>
    %539 = arith.addf %529, %538 : vector<2x256xf32>
    %c0_200 = arith.constant 0 : index
    %c163_201 = arith.constant 163 : index
    %540 = vector.load %arg6[%c0_200, %c163_201] : memref<2x512xf32, #tpu.memory_space<vmem>>, vector<2x256xf32>
    %c90 = arith.constant 90 : index
    %541 = memref.load %arg3[%c90] : memref<98xf32, #tpu.memory_space<smem>>
    %542 = vector.broadcast %541 : f32 to vector<2x256xf32>
    %543 = arith.mulf %542, %540 : vector<2x256xf32>
    %544 = arith.addf %534, %543 : vector<2x256xf32>
    %c0_202 = arith.constant 0 : index
    %c179_203 = arith.constant 179 : index
    %545 = vector.load %arg6[%c0_202, %c179_203] : memref<2x512xf32, #tpu.memory_space<vmem>>, vector<2x256xf32>
    %c97_204 = arith.constant 97 : index
    %546 = memref.load %arg3[%c97_204] : memref<98xf32, #tpu.memory_space<smem>>
    %547 = vector.broadcast %546 : f32 to vector<2x256xf32>
    %548 = arith.mulf %547, %545 : vector<2x256xf32>
    %549 = arith.addf %539, %548 : vector<2x256xf32>
    %c6_205 = arith.constant 6 : index
    %c0_206 = arith.constant 0 : index
    %550 = vector.load %arg2[%c6_205, %c0_206] : memref<7x256xf32, #tpu.memory_space<vmem>>, vector<1x256xf32>
    %551 = arith.addf %544, %549 : vector<2x256xf32>
    %552 = vector.broadcast %550 : vector<1x256xf32> to vector<2x256xf32>
    %553 = arith.mulf %551, %552 : vector<2x256xf32>
    %554 = arith.addf %400, %553 : vector<2x256xf32>
    %555 = arith.addf %554, %477 : vector<2x256xf32>
    %556 = vector.shape_cast %555 : vector<2x256xf32> to vector<2x1x256xf32>
    %c0_207 = arith.constant 0 : index
    %c0_208 = arith.constant 0 : index
    %c0_209 = arith.constant 0 : index
    %557 = vector.load %arg1[%c0_207, %c0_208, %c0_209] : memref<2x4x256xf32, #tpu.memory_space<vmem>>, vector<2x4x256xf32>
    %558 = vector.broadcast %556 : vector<2x1x256xf32> to vector<2x4x256xf32>
    %559 = arith.mulf %558, %557 : vector<2x4x256xf32>
    %c0_210 = arith.constant 0 : index
    %c0_211 = arith.constant 0 : index
    %c0_212 = arith.constant 0 : index
    %560 = vector.load %arg4[%c0_210, %c0_211, %c0_212] : memref<2x4x256xf32, #tpu.memory_space<vmem>>, vector<2x4x256xf32>
    tpu.vector_store %arg4[%c0_210, %c0_211, %c0_212], %559 {strides = array<i32>} : memref<2x4x256xf32, #tpu.memory_space<vmem>>, vector<2x4x256xf32>,
    return
  }
  func.func @transform_0(%arg0: i32) -> (i32, i32, i32) {
    %c0_i32 = arith.constant 0 : i32
    %c0_i32_0 = arith.constant 0 : i32
    %c0_i32_1 = arith.constant 0 : i32
    return %arg0, %c0_i32, %c0_i32_0 : i32, i32, i32
  }
  func.func @transform_1(%arg0: i32) -> (i32, i32) {
    %c0_i32 = arith.constant 0 : i32
    %c0_i32_0 = arith.constant 0 : i32
    %c0_i32_1 = arith.constant 0 : i32
    return %c0_i32, %c0_i32_0 : i32, i32
  }
  func.func @transform_2(%arg0: i32) -> i32 {
    %c0_i32 = arith.constant 0 : i32
    %c0_i32_0 = arith.constant 0 : i32
    return %c0_i32 : i32
  }
  func.func @transform_3(%arg0: i32) -> (i32, i32, i32) {
    %c0_i32 = arith.constant 0 : i32
    %c0_i32_0 = arith.constant 0 : i32
    %c0_i32_1 = arith.constant 0 : i32
    return %arg0, %c0_i32, %c0_i32_0 : i32, i32, i32
  }
}

</mosaic_0001>

<bundles_post_ra>
// kernel: tpu_custom_call.1
= control target key start
LH: loop header
LB: loop body
LE: loop exit
PB: predicated region body
PF: predicated region fallthrough
CT: control target
= control target key end

     0   :  { %8 = vsyncpa [#allocation5], 0  ;;  %s2270_s0 = inlined_call_operand.hbm [shape: f32[2,4,256], index: 0, kind: input, shape index: {}]   ;;  %s2271_s1 = inlined_call_operand.hbm [shape: f32[7,256], index: 1, kind: input, shape index: {}]   ;;  %s2272_s2 = inlined_call_operand.vmem [shape: f32[98], index: 2, kind: input, shape index: {}]   ;;  %s2273_s3 = inlined_call_operand.hbm [shape: f32[2,4,256], index: 3, kind: output, shape index: {}]  }
   0x1   :  { %9 = vsyncpa [#allocation9], 0 }
   0x2   :  { %10 = vsyncpa [#allocation7], 0 }
   0x3   :  { %11 = vsyncpa [#allocation6], 0  ;;  %s16_s14 = sshll.u32 %s2270_s0, 4  ;;  %s1625_s15 = smov [#allocation4]   ;;  %s17_s14 = int_to_ptr.hbm [resolvable:$true] %s16_s14 }
   0x4   :  { %s18_s16 = sshll.u32 %s1625_s15, 4  ;;  %s30_s19 = sshll.u32 %s2271_s1, 4  ;;  %s19_s16 = int_to_ptr.vmem [resolvable:$true] %s18_s16  ;;  %s31_s19 = int_to_ptr.hbm [resolvable:$true] %s30_s19 }
   0x5   :  { %s1626_s20 = smov 128   ;;  %s1627_s21 = smov 8  }
   0x6   :  { %24 = dma.hbm_to_vmem [thread:$0]  %s17_s14, 256, %s19_s16, [#allocation5], %s1626_s20, %s1626_s20, %s1627_s21  }
   0x7   :  { %s1628_s22 = smov [#allocation8]   ;;  %s41_s0 = sshll.u32 %s2272_s2, 4  ;;  %s42_s0 = int_to_ptr.vmem [resolvable:$true] %s41_s0 }
   0x8   :  { %s32_s23 = sshll.u32 %s1628_s22, 4  ;;  %s1629_s26 = smov [#allocation10]   ;;  %s33_s23 = int_to_ptr.vmem [resolvable:$true] %s32_s23 }
   0x9   :  { %35 = dma.hbm_to_vmem [thread:$0]  %s31_s19, 256, %s33_s23, [#allocation9]  }
   0xa   :  { %44 = dma.vmem_to_smem %s42_s0, 16, %s1629_s26, [#allocation7]  }
   0xb   :  { %1617 = dma.done.wait [#allocation5], 256  }
   0xc   :  { %1618 = vsyncadd [#allocation5], 4294967040 }
   0xd   :  { %1619 = dma.done.wait [#allocation9], 256  }
   0xe   :  { %1620 = vsyncadd [#allocation9], 4294967040 }
   0xf   :  { %1621 = dma.done.wait [#allocation7], 16  }
  0x10   :  { %1622 = vsyncadd [#allocation7], 4294967280 }
  0x11   :  { %57 = sfence }
  0x12   :  { %v58_v0 = vld [vmem:[#allocation4] sm:$0xff]  ;;  %v334_v1 = vld [vmem:[#allocation8] ss:$8 sm:$0x3]  ;;  %v59_v2 = vld [vmem:[#allocation4 + $0x8] sm:$0xff]  ;;  %v1630_v6 = vmov 0.0  }
  0x13   :  { %v343_v3 = vperm.slane %v334_v1, 0  ;;  %v344_v4 = vperm.slane %v334_v1, 1  ;;  %62 = vst [vmem:[#allocation1] ss:$2 sm:$0xff] %v58_v0  ;;  %vm159_vm0 = vcmask 1041408   ;;  %s1631_s1 = smov 77  }
  0x14   :  { %66 = vst [vmem:[#allocation1 + $0x10] ss:$2 sm:$0xff] %v59_v2  ;;  %vm73_vm1 = vcmask 1043456   ;;  %vm168_vm2 = vcmask 1041409   ;;  %vm170_vm3 = vcmask 1043459   ;;  %vm172_vm4 = vcmask 1045509  }
  0x15   :  { %v345_v5 = vrot.slane %v344_v4, 6  ;;  %149 = vst [vmem:[#allocation2] sm:$0x3] %v1630_v6  ;;  %vm174_vm5 = vcmask 1047559   ;;  %s1696_s2 = sld [smem:[#allocation10 + $0x2a]]  ;;  %s1632_s5 = smov 32  }
  0x16   :  { %150 = vst [vmem:[#allocation2 + $0x6] sm:$0x3] %v1630_v6  ;;  %s1410_s27 = sld [smem:[#allocation10 + $0x1c]]  ;;  %s1633_s6 = smov 64   ;;  %vm211_vm6 = vcmask 785408   ;;  %vm233_vm7 = vcmask 523264  }
  0x17   :  { %v346_v7 = vsel %vm159_vm0, %v343_v3, %v345_v5  ;;  %151 = vst [vmem:[#allocation3] sm:$0x3] %v1630_v6  ;;  %s1408_s28 = sld [smem:[#allocation10 + $0xe]]  ;;  %s1634_s8 = smov 96   ;;  %vm254_vm8 = vcmask 261120   ;;  %vm277_vm9 = vcmask 916480  }
  0x18   :  { %347 = vrot.lane.b32.xlu1 %v346_v7, %s1631_s1  ;;  %152 = vst [vmem:[#allocation3 + $0x6] sm:$0x3] %v1630_v6  ;;  %s1411_s29 = sld [smem:[#allocation10 + $0x23]]  ;;  %s1635_s17 = smov 112   ;;  %vm298_vm10 = vcmask 654336   ;;  %vm320_vm11 = vcmask 392192  }
  0x19   :  { %s1422_s30 = sld [smem:[#allocation10 + $0xf]]  ;;  %s1636_s18 = smov 16   ;;  %vm266_vm12 = vcmask 130048   ;;  %vm500_vm13 = vcmask 637952   ;;  %vm350_vm14 = vcmask 629760   ;;  %vm1121_vm15 = vcmask 670720  }
  0x1a   :  { %v63_v8 = vld.sshfl [vmem:[#allocation1] sm:$0xff pattern:$0x75316420]  ;;  %v64_v9 = vld.sshfl [vmem:[#allocation1 + $0x8] sm:$0xff pattern:$0x75316420] }
  0x1b   :  { %v67_v10 = vld.sshfl [vmem:[#allocation1 + $0x10] sm:$0xff pattern:$0x75316420]  ;;  %v68_v11 = vld.sshfl [vmem:[#allocation1 + $0x18] sm:$0xff pattern:$0x75316420] }
  0x1c   :  { %v74_v12 = vsel %vm73_vm1, %v63_v8, -inf  ;;  %v81_v13 = vsel %vm73_vm1, %v64_v9, -inf  ;;  %v88_v14 = vsel %vm73_vm1, %v67_v10, -inf  ;;  %v95_v15 = vsel %vm73_vm1, %v68_v11, -inf  ;;  %102 = vst [vmem:[#allocation1] ss:$2 sm:$0xff] %v58_v0 }
  0x1d   :  { %v75_v16 = vrot.slane %v74_v12, 4  ;;  %v82_v17 = vrot.slane %v81_v13, 4  ;;  %v89_v18 = vrot.slane %v88_v14, 4  ;;  %v96_v19 = vrot.slane %v95_v15, 4  ;;  %106 = vst [vmem:[#allocation1 + $0x10] ss:$2 sm:$0xff] %v59_v2 }
  0x1e   :  { %s1409_s4 = sld [smem:[#allocation10 + $0x15]]  ;;  %s1637_s24 = smov 48  }
  0x1f   :  { %v76_v20 = vmax.f32 %v74_v12, %v75_v16  ;;  %v83_v21 = vmax.f32 %v81_v13, %v82_v17  ;;  %v90_v22 = vmax.f32 %v88_v14, %v89_v18  ;;  %v97_v23 = vmax.f32 %v95_v15, %v96_v19  ;;  %s1424_s7 = sld [smem:[#allocation10 + $0x1d]]  ;;  %s1638_s25 = smov 80  }
  0x20   :  { %s1425_s9 = sld [smem:[#allocation10 + $0x24]] }
  0x21   :  { %v77_v24 = vrot.slane %v76_v20, 2  ;;  %v84_v25 = vrot.slane %v83_v21, 2  ;;  %v91_v26 = vrot.slane %v90_v22, 2  ;;  %v98_v27 = vrot.slane %v97_v23, 2  ;;  %s1423_s10 = sld [smem:[#allocation10 + $0x16]] }
  0x22   :  { %s1415_s11 = sld [smem:[#allocation10 + $0x3f]] }
  0x23   :  { %v78_v28 = vmax.f32 %v76_v20, %v77_v24  ;;  %v85_v29 = vmax.f32 %v83_v21, %v84_v25  ;;  %v92_v30 = vmax.f32 %v90_v22, %v91_v26  ;;  %v99_v31 = vmax.f32 %v97_v23, %v98_v27  ;;  %v103_v32 = vld.sshfl [vmem:[#allocation1] sm:$0xff pattern:$0x75316420]  ;;  %v104_v33 = vld.sshfl [vmem:[#allocation1 + $0x8] sm:$0xff pattern:$0x75316420] }
  0x24   :  { %v107_v34 = vld.sshfl [vmem:[#allocation1 + $0x10] sm:$0xff pattern:$0x75316420]  ;;  %v108_v35 = vld.sshfl [vmem:[#allocation1 + $0x18] sm:$0xff pattern:$0x75316420]  ;;  %v248_v27 = vstv %s1696_s2 }
  0x25   :  { %v79_v36 = vrot.slane %v78_v28, 1  ;;  %v86_v37 = vrot.slane %v85_v29, 1  ;;  %v93_v38 = vrot.slane %v92_v30, 1  ;;  %v100_v39 = vrot.slane %v99_v31, 1  ;;  %s1413_s12 = sld [smem:[#allocation10 + $0x31]] }
  0x26   :  { %v113_v40 = vsel %vm73_vm1, %v103_v32, 0.0  ;;  %v120_v41 = vsel %vm73_vm1, %v104_v33, 0.0  ;;  %v127_v42 = vsel %vm73_vm1, %v107_v34, 0.0  ;;  %v134_v43 = vsel %vm73_vm1, %v108_v35, 0.0  ;;  %s1426_s13 = sld [smem:[#allocation10 + $0x2b]] }
  0x27   :  { %v80_v44 = vmax.f32 %v78_v28, %v79_v36  ;;  %v87_v45 = vmax.f32 %v85_v29, %v86_v37  ;;  %v94_v46 = vmax.f32 %v92_v30, %v93_v38  ;;  %v101_v47 = vmax.f32 %v99_v31, %v100_v39  ;;  %s1418_s14 = sld [smem:[#allocation10 + $0x54]] }
  0x28   :  { %v114_v48 = vrot.slane %v113_v40, 4  ;;  %v121_v49 = vrot.slane %v120_v41, 4  ;;  %v128_v50 = vrot.slane %v127_v42, 4  ;;  %v135_v51 = vrot.slane %v134_v43, 4  ;;  %s1416_s15 = sld [smem:[#allocation10 + $0x46]] }
  0x29   :  { %v157_v52 = vrot.slane %v87_v45, 6  ;;  %v158_v53 = vrot.slane %v101_v47, 6  ;;  %v227_v28 = vstv %s1410_s27  ;;  %v205_v29 = vstv %s1408_s28  ;;  %s1414_s16 = sld [smem:[#allocation10 + $0x38]] }
  0x2a   :  { %v115_v54 = vadd.f32 %v114_v48, %v113_v40  ;;  %v122_v55 = vadd.f32 %v121_v49, %v120_v41  ;;  %v129_v56 = vadd.f32 %v128_v50, %v127_v42  ;;  %v136_v57 = vadd.f32 %v135_v51, %v134_v43  ;;  %s1427_s19 = sld [smem:[#allocation10 + $0x32]] }
  0x2b   :  { %v160_v58 = vsel %vm159_vm0, %v80_v44, %v157_v52  ;;  %v161_v59 = vsel %vm159_vm0, %v94_v46, %v158_v53  ;;  %v238_v38 = vstv %s1411_s29  ;;  %v364_v39 = vstv %s1422_s30  ;;  %s1419_s22 = sld [smem:[#allocation10 + $0x5b]] }
  0x2c   :  { %v116_v60 = vrot.slane %v115_v54, 2  ;;  %v123_v61 = vrot.slane %v122_v55, 2  ;;  %v130_v62 = vrot.slane %v129_v56, 2  ;;  %v137_v63 = vrot.slane %v136_v57, 2  ;;  %s1417_s23 = sld [smem:[#allocation10 + $0x4d]] }
  0x2d   :  { %v167_v0 = vrot.slane %v161_v59, 7  ;;  %v216_v40 = vstv %s1409_s4  ;;  %v384_v44 = vstv %s1424_s7  ;;  %v394_v45 = vstv %s1425_s9  ;;  %s1430_s0 = sld [smem:[#allocation10 + $0x47]] }
  0x2e   :  { %v117_v1 = vadd.f32 %v116_v60, %v115_v54  ;;  %v124_v2 = vadd.f32 %v123_v61, %v122_v55  ;;  %v131_v3 = vadd.f32 %v130_v62, %v129_v56  ;;  %v138_v4 = vadd.f32 %v137_v63, %v136_v57  ;;  %s1428_s26 = sld [smem:[#allocation10 + $0x39]] }
  0x2f   :  { %v169_v5 = vsel %vm168_vm2, %v167_v0, %v160_v58  ;;  %v374_v46 = vstv %s1423_s10  ;;  %v282_v51 = vstv %s1415_s11  ;;  %v260_v52 = vstv %s1413_s12  ;;  %s1429_s2 = sld [smem:[#allocation10 + $0x40]]  ;;  %s1639_s12 = smov 78  }
  0x30   :  { %v118_v6 = vrot.slane %v117_v1, 1  ;;  %v125_v7 = vrot.slane %v124_v2, 1  ;;  %v132_v8 = vrot.slane %v131_v3, 1  ;;  %v139_v9 = vrot.slane %v138_v4, 1  ;;  %s1433_s27 = sld [smem:[#allocation10 + $0x5c]] }
  0x31   :  { %v171_v10 = vsel %vm170_vm3, %v167_v0, %v169_v5  ;;  %v404_v53 = vstv %s1426_s13  ;;  %v314_v58 = vstv %s1418_s14  ;;  %v292_v59 = vstv %s1416_s15  ;;  %s1431_s28 = sld [smem:[#allocation10 + $0x4e]] }
  0x32   :  { %v119_v11 = vadd.f32 %v118_v6, %v117_v1  ;;  %v126_v12 = vadd.f32 %v125_v7, %v124_v2  ;;  %v133_v13 = vadd.f32 %v132_v8, %v131_v3  ;;  %v140_v14 = vadd.f32 %v139_v9, %v138_v4  ;;  %s1432_s29 = sld [smem:[#allocation10 + $0x55]] }
  0x33   :  { %v173_v15 = vsel %vm172_vm4, %v167_v0, %v171_v10  ;;  %v271_v60 = vstv %s1414_s16  ;;  %v325_v1 = vstv %s1419_s22  ;;  %v304_v2 = vstv %s1417_s23  ;;  %s1436_s30 = sld [smem:[#allocation10 + $0x10]] }
  0x34   :  { %v145_v16 = vmul.f32 0.25, %v119_v11  ;;  %v146_v17 = vmul.f32 0.25, %v126_v12  ;;  %v147_v18 = vmul.f32 0.25, %v133_v13  ;;  %v148_v19 = vmul.f32 0.25, %v140_v14  ;;  %s1437_s4 = sld [smem:[#allocation10 + $0x17]] }
  0x35   :  { %v175_v20 = vsel %vm174_vm5, %v167_v0, %v173_v15  ;;  %v414_v0 = vstv %s1427_s19  ;;  %v444_v6 = vstv %s1430_s0  ;;  %v424_v7 = vstv %s1428_s26  ;;  %v484_v15 = vld [vmem:[#allocation8 + $0x1] ss:$8 sm:$0x3]  ;;  %s1453_s7 = sld [smem:[#allocation10 + $0x26]] }
  0x36   :  { %177 = vst [vmem:[#allocation2 + $0x2] sm:$0xf] %v175_v20  ;;  %v182_v21 = vrot.slane %v146_v17, 6  ;;  %v183_v22 = vrot.slane %v148_v19, 6  ;;  %v434_v8 = vstv %s1429_s2  ;;  %v474_v12 = vstv %s1433_s27  ;;  %s1479_s9 = sld [smem:[#allocation10 + $0x1a]] }
  0x37   :  { %v454_v13 = vstv %s1431_s28  ;;  %v494_v19 = vperm.slane %v484_v15, 1  ;;  %s1451_s10 = sld [smem:[#allocation10 + $0x18]] }
  0x38   :  { %v184_v23 = vsel %vm159_vm0, %v145_v16, %v182_v21  ;;  %v185_v24 = vsel %vm159_vm0, %v147_v18, %v183_v22  ;;  %v464_v14 = vstv %s1432_s29  ;;  %v493_v22 = vperm.slane %v484_v15, 0  ;;  %s1481_s11 = sld [smem:[#allocation10 + $0x28]] }
  0x39   :  { %v188_v25 = vrot.slane %v185_v24, 7  ;;  %v514_v20 = vstv %s1436_s30  ;;  %s1457_s13 = sld [smem:[#allocation10 + $0x42]] }
  0x3a   :  { %v524_v21 = vstv %s1437_s4  ;;  %s1455_s14 = sld [smem:[#allocation10 + $0x34]] }
  0x3b   :  { %v189_v26 = vsel %vm168_vm2, %v188_v25, %v184_v23  ;;  %v495_v23 = vrot.slane %v494_v19, 6  ;;  %s1459_s15 = sld [smem:[#allocation10 + $0x50]] }
  0x3c   :  { %v190_v30 = vsel %vm170_vm3, %v188_v25, %v189_v26  ;;  %s1485_s16 = sld [smem:[#allocation10 + $0x44]] }
  0x3d   :  { %v191_v31 = vsel %vm172_vm4, %v188_v25, %v190_v30  ;;  %v1706_v32 = vld [vmem:[#allocation2] sm:$0x3f]  ;;  %v496_v26 = vsel %vm159_vm0, %v493_v22, %v495_v23  ;;  %v682_v30 = vstv %s1451_s10  ;;  %s1483_s19 = sld [smem:[#allocation10 + $0x36]]  ;;  %vm650_vm4 = vcmask 646144  }
  0x3e   :  { %v1708_v33 = vld [vmem:[#allocation2 + $0x2] sm:$0x3f]  ;;  %v192_v34 = vsel %vm174_vm5, %v188_v25, %v191_v31  ;;  %v206_v37 = vmul.f32 %v205_v29, %v1706_v32  ;;  %v365_v42 = vmul.f32 %v364_v39, %v1706_v32  ;;  %v217_v43 = vmul.f32 %v216_v40, %v1706_v32  ;;  %s1487_s22 = sld [smem:[#allocation10 + $0x52]] }
  0x3f   :  { %v249_v35 = vmul.f32 %v248_v27, %v1708_v33  ;;  %v228_v36 = vmul.f32 %v227_v28, %v1708_v33  ;;  %194 = vst [vmem:[#allocation3 + $0x2] sm:$0xf] %v192_v34  ;;  %v239_v41 = vmul.f32 %v238_v38, %v1708_v33  ;;  %v385_v47 = vmul.f32 %v384_v44, %v1708_v33  ;;  %v680_v29 = vld [vmem:[#allocation2 + $0x2] sm:$0xf]  ;;  %s1489_s23 = sld [smem:[#allocation10 + $0x60]] }
  0x40   :  { %208 = vrot.lane.b32.xlu0 %v206_v37, %s1634_s8  ;;  %v395_v48 = vmul.f32 %v394_v45, %v1708_v33  ;;  %v375_v49 = vmul.f32 %v374_v46, %v1706_v32  ;;  %v405_v56 = vmul.f32 %v404_v53, %v1708_v33  ;;  %v515_v24 = vmul.f32 %v514_v20, %v1706_v32  ;;  %s1461_s0 = sld [smem:[#allocation10 + $0x5e]] }
  0x41   :  { %251 = vrot.lane.b32.xlu2 %v249_v35, %s1632_s5  ;;  %230 = vrot.lane.b32.xlu1 %v228_v36, %s1633_s6  ;;  %v525_v25 = vmul.f32 %v524_v21, %v1706_v32  ;;  %v702_v27 = vstv %s1453_s7  ;;  %v995_v28 = vstv %s1479_s9  ;;  %v683_v35 = vmul.f32 %v682_v30, %v680_v29  ;;  %s1439_s26 = sld [smem:[#allocation10 + $0x25]] }
  0x42   :  { %v703_v31 = vmul.f32 %v702_v27, %v1708_v33  ;;  %v996_v34 = vmul.f32 %v995_v28, %v1708_v33  ;;  %v1015_v36 = vstv %s1481_s11  ;;  %v742_v37 = vstv %s1457_s13  ;;  %s1450_s2 = sld [smem:[#allocation10 + $0x11]] }
  0x43   :  { %v722_v38 = vstv %s1455_s14  ;;  %v1016_v39 = vmul.f32 %v1015_v36, %v1708_v33  ;;  %v1035_v44 = vstv %s1483_s19  ;;  %s1438_s27 = sld [smem:[#allocation10 + $0x1e]]  ;;  %vm964_vm5 = vcmask 662528  }
  0x44   :  { %s1441_s28 = sld [smem:[#allocation10 + $0x33]] }
  0x45   :  { %s1452_s29 = sld [smem:[#allocation10 + $0x1f]] }
  0x46   :  { %v1728_v50 = vld [vmem:[#allocation3] sm:$0x3f]  ;;  %s1465_s30 = sld [smem:[#allocation10 + $0x19]] }
  0x47   :  { %v283_v54 = vmul.f32 %v282_v51, %v1728_v50  ;;  %v261_v55 = vmul.f32 %v260_v52, %v1728_v50  ;;  %v1736_v57 = vld [vmem:[#allocation3 + $0x2] sm:$0x3f]  ;;  %v293_v62 = vmul.f32 %v292_v59, %v1728_v50  ;;  %v272_v63 = vmul.f32 %v271_v60, %v1728_v50  ;;  %s1796_s4 = sld [smem:[#allocation10]] }
  0x48   :  { %219 = vrot.lane.b32.xlu0 %v217_v43, %s1634_s8  ;;  %v315_v61 = vmul.f32 %v314_v58, %v1736_v57  ;;  %v415_v3 = vmul.f32 %v414_v0, %v1728_v50  ;;  %v326_v4 = vmul.f32 %v325_v1, %v1736_v57  ;;  %v305_v5 = vmul.f32 %v304_v2, %v1736_v57  ;;  %s1802_s7 = sld [smem:[#allocation10 + $0x13]] }
  0x49   :  { %241 = vrot.lane.b32.xlu1 %v239_v41, %s1633_s6  ;;  %367 = vrot.lane.b32.xlu2 %v365_v42, %s1634_s8  ;;  %v445_v9 = vmul.f32 %v444_v6, %v1728_v50  ;;  %v425_v10 = vmul.f32 %v424_v7, %v1728_v50  ;;  %v435_v11 = vmul.f32 %v434_v8, %v1728_v50  ;;  %v763_v42 = vstv %s1459_s15  ;;  %s1493_s9 = sld [smem:[#allocation10 + $0x1b]] }
  0x4a   :  { %v475_v16 = vmul.f32 %v474_v12, %v1736_v57  ;;  %v455_v17 = vmul.f32 %v454_v13, %v1736_v57  ;;  %v465_v18 = vmul.f32 %v464_v14, %v1736_v57  ;;  %v743_v40 = vmul.f32 %v742_v37, %v1728_v50  ;;  %s1467_s10 = sld [smem:[#allocation10 + $0x27]] }
  0x4b   :  { %v723_v41 = vmul.f32 %v722_v38, %v1728_v50  ;;  %v1055_v43 = vstv %s1485_s16  ;;  %v764_v45 = vmul.f32 %v763_v42, %v1736_v57  ;;  %v783_v52 = vstv %s1461_s0  ;;  %s1813_s11 = sld [smem:[#allocation10 + $0x2d]] }
  0x4c   :  { %v1056_v46 = vmul.f32 %v1055_v43, %v1728_v50  ;;  %v671_v58 = vstv %s1450_s2  ;;  %v534_v60 = vstv %s1438_s27  ;;  %v564_v1 = vstv %s1441_s28  ;;  %s1821_s13 = sld [smem:[#allocation10 + $0x41]] }
  0x4d   :  { %v692_v2 = vstv %s1452_s29  ;;  %v197_v8 = vstv %s1796_s4  ;;  %s1823_s14 = sld [smem:[#allocation10 + $0x1]] }
  0x4e   :  { %v693_v6 = vmul.f32 %v692_v2, %v1708_v33  ;;  %s1834_s15 = sld [smem:[#allocation10 + $0x29]] }
  0x4f   :  { %s1445_s16 = sld [smem:[#allocation10 + $0x4f]] }
  0x50   :  { %377 = vrot.lane.b32.xlu0 %v375_v49, %s1634_s8  ;;  %v1095_v49 = vstv %s1489_s23  ;;  %v858_v13 = vstv %s1467_s10  ;;  %s1480_s19 = sld [smem:[#allocation10 + $0x21]] }
  0x51   :  { %387 = vrot.lane.b32.xlu1 %v385_v47, %s1633_s6  ;;  %397 = vrot.lane.b32.xlu2 %v395_v48, %s1633_s6  ;;  %v1036_v47 = vmul.f32 %v1035_v44, %v1728_v50  ;;  %v1075_v48 = vstv %s1487_s22  ;;  %v859_v21 = vmul.f32 %v858_v13, %v1708_v33  ;;  %v712_v27 = vstv %s1813_s11  ;;  %s1858_s22 = sld [smem:[#allocation10 + $0x43]] }
  0x52   :  { %v1076_v53 = vmul.f32 %v1075_v48, %v1736_v57  ;;  %v713_v38 = vmul.f32 %v712_v27, %v1708_v33  ;;  %s1482_s23 = sld [smem:[#allocation10 + $0x2f]] }
  0x53   :  { %s1456_s0 = sld [smem:[#allocation10 + $0x3b]] }
  0x54   :  { %v1171_v43 = vstv %s1834_s15  ;;  %s1876_s2 = sld [smem:[#allocation10 + $0x49]] }
  0x55   :  { %v604_v44 = vstv %s1445_s16  ;;  %s1880_s27 = sld [smem:[#allocation10 + $0x37]] }
  0x56   :  { %v1005_v48 = vstv %s1480_s19  ;;  %s1885_s28 = sld [smem:[#allocation10 + $0x7]]  ;;  %s1640_s19 = smov 82  }
  0x57   :  { %s1889_s29 = sld [smem:[#allocation10 + $0x8]] }
  0x58   :  { %407 = vrot.lane.b32.xlu0 %v405_v56, %s1632_s5  ;;  %v544_v56 = vstv %s1439_s26  ;;  %s1872_s26 = sld [smem:[#allocation10 + $0x5d]] }
  0x59   :  { %285 = vrot.lane.b32.xlu1 %v283_v54, %s1635_s17  ;;  %263 = vrot.lane.b32.xlu2 %v261_v55, %s1636_s18  ;;  %v1096_v54 = vmul.f32 %v1095_v49, %v1736_v57  ;;  %v784_v55 = vmul.f32 %v783_v52, %v1736_v57  ;;  %v1172_v52 = vmul.f32 %v1171_v43, %v1708_v33  ;;  %s1898_s4 = sld [smem:[#allocation10 + $0x45]] }
  0x5a   :  { %v753_v13 = vstv %s1876_s2  ;;  %s1926_s10 = sld [smem:[#allocation10 + $0x4b]] }
  0x5b   :  { %s1931_s11 = sld [smem:[#allocation10 + $0x57]] }
  0x5c   :  { %s1449_s15 = sld [smem:[#allocation10 + $0xa]] }
  0x5d   :  { %s1448_s16 = sld [smem:[#allocation10 + $0x3]] }
  0x5e   :  { %s1464_s2 = sld [smem:[#allocation10 + $0x12]] }
  0x60   :  { %274 = vrot.lane.b32.xlu0 %v272_v63, %s1635_s17  ;;  %v535_v63 = vmul.f32 %v534_v60, %v1708_v33 }
  0x61   :  { %317 = vrot.lane.b32.xlu1 %v315_v61, %s1637_s24  ;;  %295 = vrot.lane.b32.xlu2 %v293_v62, %s1638_s25  ;;  %v545_v61 = vmul.f32 %v544_v56, %v1708_v33  ;;  %v672_v62 = vmul.f32 %v671_v58, %v1706_v32  ;;  %v898_v58 = vstv %s1858_s22  ;;  %s2015_s22 = sld [smem:[#allocation10 + $0x2]] }
  0x68   :  { %307 = vrot.lane.b32.xlu0 %v305_v5, %s1638_s25  ;;  %v565_v5 = vmul.f32 %v564_v1, %v1728_v50 }
  0x69   :  { %417 = vrot.lane.b32.xlu1 %v415_v3, %s1636_s18  ;;  %328 = vrot.lane.b32.xlu2 %v326_v4, %s1637_s24  ;;  %v838_v4 = vstv %s1465_s30  ;;  %s1893_s30 = sld [smem:[#allocation10 + $0x3d]] }
  0x6a   :  { %v839_v7 = vmul.f32 %v838_v4, %v1708_v33  ;;  %v899_v4 = vmul.f32 %v898_v58, %v1728_v50 }
  0x70   :  { %437 = vrot.lane.b32.xlu0 %v435_v11, %s1635_s17 }
  0x71   :  { %447 = vrot.lane.b32.xlu1 %v445_v9, %s1638_s25  ;;  %427 = vrot.lane.b32.xlu2 %v425_v10, %s1635_s17  ;;  %v985_v9 = vstv %s1802_s7  ;;  %v1151_v10 = vstv %s1493_s9  ;;  %s1906_s7 = sld [smem:[#allocation10 + $0x51]] }
  0x72   :  { %v986_v19 = vmul.f32 %v985_v9, %v1706_v32  ;;  %v1152_v20 = vmul.f32 %v1151_v10, %v1708_v33  ;;  %v624_v10 = vstv %s1872_s26  ;;  %s1920_s9 = sld [smem:[#allocation10 + $0x5f]] }
  0x73   :  { %s1468_s26 = sld [smem:[#allocation10 + $0x2e]] }
  0x78   :  { %467 = vrot.lane.b32.xlu0 %v465_v18, %s1637_s24 }
  0x79   :  { %477 = vrot.lane.b32.xlu1 %v475_v16, %s1637_s24  ;;  %457 = vrot.lane.b32.xlu2 %v455_v17, %s1638_s25  ;;  %v198_v16 = vmul.f32 %v197_v8, %v1706_v32 }
  0x80   :  { %497 = vrot.lane.b32.xlu0 %v496_v26, %s1639_s12  ;;  %s1817_s12 = sld [smem:[#allocation10 + $0x35]] }
  0x81   :  { %517 = vrot.lane.b32.xlu1 %v515_v24, %s1634_s8  ;;  %527 = vrot.lane.b32.xlu2 %v525_v25, %s1634_s8 }
  0x86   :  { %v878_v28 = vstv %s1817_s12  ;;  %s1501_s12 = sld [smem:[#allocation10 + $0x53]] }
  0x88   :  { %685 = vrot.lane.b32.xlu0 %v683_v35, %s1634_s8 }
  0x89   :  { %705 = vrot.lane.b32.xlu1 %v703_v31, %s1633_s6  ;;  %998 = vrot.lane.b32.xlu2 %v996_v34, %s1634_s8  ;;  %v584_v31 = vstv %s1821_s13  ;;  %v356_v34 = vstv %s1823_s14  ;;  %s1503_s13 = sld [smem:[#allocation10 + $0x61]] }
  0x8a   :  { %v1800_v0 = vpop.permute.xlu1 %347  ;;  %s1477_s14 = sld [smem:[#allocation10 + $0xc]] }
  0x90   :  { %725 = vrot.lane.b32.xlu0 %v723_v41, %s1636_s18  ;;  %v357_v41 = vmul.f32 %v356_v34, %v1706_v32  ;;  %v360_v34 = vstv %s1889_s29  ;;  %s1492_s29 = sld [smem:[#allocation10 + $0x14]] }
  0x91   :  { %1018 = vrot.lane.b32.xlu1 %v1016_v39, %s1633_s6  ;;  %745 = vrot.lane.b32.xlu2 %v743_v40, %s1635_s17  ;;  %v879_v39 = vmul.f32 %v878_v28, %v1728_v50  ;;  %v585_v40 = vmul.f32 %v584_v31, %v1728_v50  ;;  %v201_v28 = vstv %s1885_s28  ;;  %s1470_s28 = sld [smem:[#allocation10 + $0x3c]] }
  0x92   :  { %v202_v43 = vmul.f32 %v201_v28, %v1706_v32 }
  0x98   :  { %1038 = vrot.lane.b32.xlu0 %v1036_v47, %s1636_s18 }
  0x99   :  { %766 = vrot.lane.b32.xlu1 %v764_v45, %s1638_s25  ;;  %1058 = vrot.lane.b32.xlu2 %v1056_v46, %s1635_s17 }
  0x9b   :  { %v252_v51 = vpop.permute.xlu2 %251 }
  0x9c   :  { %v253_v17 = vrot.slane %v252_v51, 6 }
  0x9e   :  { %v255_v25 = vsel %vm254_vm8, %v253_v17, %v252_v51 }
  0xa0   :  { %786 = vrot.lane.b32.xlu0 %v784_v55, %s1637_s24  ;;  %v1006_v55 = vmul.f32 %v1005_v48, %v1708_v33 }
  0xa1   :  { %1078 = vrot.lane.b32.xlu1 %v1076_v53, %s1638_s25  ;;  %1098 = vrot.lane.b32.xlu2 %v1096_v54, %s1637_s24  ;;  %v605_v53 = vmul.f32 %v604_v44, %v1736_v57  ;;  %v361_v44 = vmul.f32 %v360_v34, %v1706_v32 }
  0xa3   :  { %v1791_v59 = vpop.permute.xlu2 %367 }
  0xa4   :  { %v369_v35 = vrot.slane %v1791_v59, 2 }
  0xa6   :  { %v370_v42 = vsel %vm211_vm6, %v1791_v59, %v369_v35  ;;  %v1025_v59 = vstv %s1482_s23  ;;  %s1466_s23 = sld [smem:[#allocation10 + $0x20]] }
  0xa7   :  { %v372_v45 = vadd.f32 %v370_v42, %v357_v41  ;;  %v918_v42 = vstv %s1906_s7  ;;  %s1494_s7 = sld [smem:[#allocation10 + $0x22]] }
  0xa8   :  { %537 = vrot.lane.b32.xlu0 %v535_v63, %s1633_s6 }
  0xa9   :  { %547 = vrot.lane.b32.xlu1 %v545_v61, %s1633_s6  ;;  %674 = vrot.lane.b32.xlu2 %v672_v62, %s1634_s8  ;;  %v732_v62 = vstv %s1456_s0  ;;  %s2031_s0 = sld [smem:[#allocation10 + $0x2c]] }
  0xab   :  { %v1805_v3 = vpop.permute.xlu2 %397 }
  0xb0   :  { %841 = vrot.lane.b32.xlu0 %v839_v7, %s1634_s8 }
  0xb1   :  { %567 = vrot.lane.b32.xlu1 %v565_v5, %s1636_s18  ;;  %695 = vrot.lane.b32.xlu2 %v693_v6, %s1633_s6  ;;  %v1026_v5 = vmul.f32 %v1025_v59, %v1708_v33  ;;  %v733_v6 = vmul.f32 %v732_v62, %v1728_v50 }
  0xb2   :  { %v209_v15 = vpop.permute.xlu0 %208 }
  0xb3   :  { %v231_v11 = vpop.permute.xlu1 %230  ;;  %v1819_v12 = vpop.permute.xlu2 %263  ;;  %v210_v18 = vrot.slane %v209_v15, 2 }
  0xb4   :  { %v232_v14 = vrot.slane %v231_v11, 6  ;;  %v265_v58 = vrot.slane %v1819_v12, 6 }
  0xb5   :  { %v212_v23 = vsel %vm211_vm6, %v209_v15, %v210_v18  ;;  %v1191_v18 = vstv %s1880_s27  ;;  %s1442_s27 = sld [smem:[#allocation10 + $0x3a]] }
  0xb6   :  { %v234_v22 = vsel %vm233_vm7, %v232_v14, %v231_v11  ;;  %v214_v24 = vadd.f32 %v212_v23, %v198_v16  ;;  %v751_v11 = vld [vmem:[#allocation3 + $0x2] sm:$0xf] }
  0xb7   :  { %v754_v23 = vmul.f32 %v753_v13, %v751_v11 }
  0xb8   :  { %v236_v26 = vadd.f32 %v234_v22, %v214_v24  ;;  %861 = vrot.lane.b32.xlu0 %v859_v21, %s1633_s6  ;;  %v625_v22 = vmul.f32 %v624_v10, %v1736_v57  ;;  %v1192_v24 = vmul.f32 %v1191_v18, %v1728_v50 }
  0xb9   :  { %988 = vrot.lane.b32.xlu1 %v986_v19, %s1634_s8  ;;  %1154 = vrot.lane.b32.xlu2 %v1152_v20, %s1634_s8 }
  0xba   :  { %v1846_v36 = vpop.permute.xlu0 %219  ;;  %v1848_v37 = vadd.f32 %v255_v25, %v236_v26 }
  0xbb   :  { %v1839_v29 = vpop.permute.xlu1 %241  ;;  %v1841_v30 = vpop.permute.xlu2 %295  ;;  %v221_v31 = vrot.slane %v1846_v36, 2 }
  0xbc   :  { %v297_v15 = vrot.slane %v1841_v30, 2  ;;  %v243_v48 = vrot.slane %v1839_v29, 6 }
  0xbe   :  { %v299_v25 = vsel %vm298_vm10, %v1841_v30, %v297_v15 }
  0xc0   :  { %587 = vrot.lane.b32.xlu0 %v585_v40, %s1635_s17 }
  0xc1   :  { %715 = vrot.lane.b32.xlu1 %v713_v38, %s1632_s5  ;;  %881 = vrot.lane.b32.xlu2 %v879_v39, %s1636_s18  ;;  %v1045_v39 = vstv %s1893_s30  ;;  %s1444_s30 = sld [smem:[#allocation10 + $0x48]] }
  0xc2   :  { %v1864_v51 = vpop.permute.xlu0 %377 }
  0xc3   :  { %v388_v46 = vpop.permute.xlu1 %387  ;;  %v1862_v47 = vpop.permute.xlu2 %328  ;;  %v379_v38 = vrot.slane %v1864_v51, 2 }
  0xc4   :  { %v389_v49 = vrot.slane %v388_v46, 6 }
  0xc6   :  { %v390_v54 = vsel %vm233_vm7, %v389_v49, %v388_v46  ;;  %v222_v49 = vsel %vm211_vm6, %v1846_v36, %v221_v31  ;;  %v244_v36 = vsel %vm233_vm7, %v243_v48, %v1839_v29  ;;  %v773_v29 = vstv %s1931_s11  ;;  %s1496_s11 = sld [smem:[#allocation10 + $0x30]] }
  0xc7   :  { %v392_v56 = vadd.f32 %v390_v54, %v372_v45  ;;  %v399_v54 = vrot.slane %v1805_v3, 6  ;;  %v224_v59 = vadd.f32 %v222_v49, %v202_v43 }
  0xc8   :  { %1008 = vrot.lane.b32.xlu0 %v1006_v55, %s1633_s6  ;;  %v380_v55 = vsel %vm211_vm6, %v1864_v51, %v379_v38 }
  0xc9   :  { %1174 = vrot.lane.b32.xlu1 %v1172_v52, %s1633_s6  ;;  %607 = vrot.lane.b32.xlu2 %v605_v53, %s1638_s25  ;;  %v1046_v52 = vmul.f32 %v1045_v39, %v1728_v50  ;;  %v382_v62 = vadd.f32 %v380_v55, %v361_v44  ;;  %v400_v51 = vsel %vm233_vm7, %v399_v54, %v1805_v3 }
  0xca   :  { %v408_v1 = vpop.permute.xlu0 %407 }
  0xcb   :  { %v1878_v60 = vpop.permute.xlu1 %285  ;;  %v428_v61 = vpop.permute.xlu2 %427  ;;  %v409_v2 = vrot.slane %v408_v1, 6  ;;  %v402_v3 = vadd.f32 %v400_v51, %v382_v62  ;;  %v667_v51 = vstv %s1449_s15  ;;  %s1643_s15 = smov 83  }
  0xcc   :  { %v429_v63 = vrot.slane %v428_v61, 2 }
  0xcd   :  { %v410_v8 = vsel %vm254_vm8, %v409_v2, %v408_v1  ;;  %v1065_v1 = vstv %s1926_s10  ;;  %v267_v2 = vsel %vm266_vm12, %v265_v58, %v1819_v12  ;;  %v1251_v58 = vstv %s1503_s13  ;;  %s1474_s10 = sld [smem:[#allocation10 + $0x58]] }
  0xce   :  { %v430_v7 = vsel %vm277_vm9, %v428_v61, %v429_v63  ;;  %v412_v9 = vadd.f32 %v410_v8, %v392_v56  ;;  %v919_v56 = vmul.f32 %v918_v42, %v1736_v57  ;;  %v938_v63 = vstv %s1920_s9  ;;  %s1446_s9 = sld [smem:[#allocation10 + $0x56]] }
  0xcf   :  { %v939_v11 = vmul.f32 %v938_v63, %v1736_v57  ;;  %v981_v63 = vstv %s1477_s14  ;;  %s1491_s13 = sld [smem:[#allocation10 + $0xd]]  ;;  %s1641_s14 = smov 79  }
  0xd0   :  { %735 = vrot.lane.b32.xlu0 %v733_v6, %s1635_s17  ;;  %v1900_v14 = vadd.f32 %v430_v7, %v412_v9  ;;  %v246_v7 = vadd.f32 %v244_v36, %v224_v59  ;;  %v1252_v36 = vmul.f32 %v1251_v58, %v1736_v57 }
  0xd1   :  { %901 = vrot.lane.b32.xlu1 %v899_v4, %s1635_s17  ;;  %1028 = vrot.lane.b32.xlu2 %v1026_v5, %s1632_s5  ;;  %v287_v4 = vrot.slane %v1878_v60, 2 }
  0xd2   :  { %v275_v19 = vpop.permute.xlu0 %274 }
  0xd3   :  { %v318_v16 = vpop.permute.xlu1 %317  ;;  %v1903_v17 = vpop.permute.xlu2 %457  ;;  %v276_v21 = vrot.slane %v275_v19, 2 }
  0xd4   :  { %v319_v20 = vrot.slane %v318_v16, 6  ;;  %v459_v12 = vrot.slane %v1903_v17, 6 }
  0xd5   :  { %v278_v26 = vsel %vm277_vm9, %v275_v19, %v276_v21  ;;  %v774_v19 = vmul.f32 %v773_v29, %v1736_v57 }
  0xd6   :  { %v280_v27 = vadd.f32 %v278_v26, %v1848_v37  ;;  %v321_v35 = vsel %vm320_vm11, %v319_v20, %v318_v16  ;;  %v1211_v37 = vstv %s1898_s4  ;;  %v1066_v16 = vmul.f32 %v1065_v1, %v1736_v57  ;;  %s1472_s4 = sld [smem:[#allocation10 + $0x4a]] }
  0xd7   :  { %v1212_v53 = vmul.f32 %v1211_v37, %v1728_v50  ;;  %v288_v20 = vsel %vm277_vm9, %v1878_v60, %v287_v4  ;;  %v460_v31 = vsel %vm298_vm10, %v459_v12, %v1903_v17 }
  0xd8   :  { %v301_v30 = vadd.f32 %v299_v25, %v280_v27  ;;  %1194 = vrot.lane.b32.xlu0 %v1192_v24, %s1636_s18  ;;  %v269_v24 = vadd.f32 %v267_v2, %v246_v7  ;;  %v330_v25 = vrot.slane %v1862_v47, 6  ;;  %s1488_s18 = sld [smem:[#allocation10 + $0x59]] }
  0xd9   :  { %627 = vrot.lane.b32.xlu1 %v625_v22, %s1637_s24  ;;  %756 = vrot.lane.b32.xlu2 %v754_v23, %s1638_s25 }
  0xda   :  { %v308_v45 = vpop.permute.xlu0 %307  ;;  %v1935_v46 = vadd.f32 %v321_v35, %v301_v30  ;;  %v290_v28 = vadd.f32 %v288_v20, %v269_v24  ;;  %v331_v30 = vsel %vm320_vm11, %v330_v25, %v1862_v47  ;;  %v1231_v47 = vstv %s1501_s12  ;;  %s2116_s12 = sld [smem:[#allocation10 + $0x4c]] }
  0xdb   :  { %v418_v40 = vpop.permute.xlu1 %417  ;;  %v1928_v41 = vpop.permute.xlu2 %527  ;;  %v309_v13 = vrot.slane %v308_v45, 6  ;;  %v1232_v54 = vmul.f32 %v1231_v47, %v1736_v57 }
  0xdc   :  { %v419_v61 = vrot.slane %v418_v40, 6 }
  0xdd   :  { %v310_v26 = vsel %vm298_vm10, %v309_v13, %v308_v45 }
  0xde   :  { %v420_v8 = vsel %vm266_vm12, %v419_v61, %v418_v40  ;;  %v312_v34 = vadd.f32 %v310_v26, %v290_v28  ;;  %v1085_v45 = vstv %s1488_s18  ;;  %v1105_v61 = vld [vmem:[#allocation8 + $0x5] ss:$8 sm:$0x3]  ;;  %s1435_s18 = sld [smem:[#allocation10 + $0x9]] }
  0xdf   :  { %v422_v21 = vadd.f32 %v420_v8, %v402_v3  ;;  %v1115_v62 = vperm.slane %v1105_v61, 1  ;;  %v663_v8 = vstv %s1448_s16  ;;  %v668_v3 = vmul.f32 %v667_v51, %v1706_v32  ;;  %s1644_s16 = smov 124  }
  0xe0   :  { %921 = vrot.lane.b32.xlu0 %v919_v56, %s1638_s25  ;;  %v333_v44 = vadd.f32 %v331_v30, %v312_v34  ;;  %v506_v51 = vstv %s2015_s22  ;;  %s1490_s22 = sld [smem:[#allocation10 + $0x6]] }
  0xe1   :  { %1048 = vrot.lane.b32.xlu1 %v1046_v52, %s1635_s17  ;;  %1214 = vrot.lane.b32.xlu2 %v1212_v53, %s1635_s17  ;;  %v1086_v53 = vmul.f32 %v1085_v45, %v1736_v57  ;;  %v1116_v29 = vrot.slane %v1115_v62, 6 }
  0xe2   :  { %v438_v10 = vpop.permute.xlu0 %437 }
  0xe3   :  { %v448_v5 = vpop.permute.xlu1 %447  ;;  %v1959_v6 = vpop.permute.xlu2 %998  ;;  %v439_v15 = vrot.slane %v438_v10, 2 }
  0xe4   :  { %v449_v9 = vrot.slane %v448_v5, 2  ;;  %v1000_v7 = vrot.slane %v1959_v6, 6 }
  0xe5   :  { %v440_v23 = vsel %vm277_vm9, %v438_v10, %v439_v15 }
  0xe6   :  { %v450_v18 = vsel %vm298_vm10, %v448_v5, %v449_v9  ;;  %v442_v27 = vadd.f32 %v440_v23, %v422_v21  ;;  %v1114_v5 = vperm.slane %v1105_v61, 0 }
  0xe7   :  { %v452_v22 = vadd.f32 %v450_v18, %v1900_v14  ;;  %v1001_v18 = vsel %vm211_vm6, %v1000_v7, %v1959_v6 }
  0xe8   :  { %776 = vrot.lane.b32.xlu0 %v774_v19, %s1637_s24  ;;  %v462_v39 = vadd.f32 %v460_v31, %v442_v27  ;;  %v1117_v12 = vsel %vm159_vm0, %v1114_v5, %v1116_v29 }
  0xe9   :  { %941 = vrot.lane.b32.xlu1 %v939_v11, %s1637_s24  ;;  %1068 = vrot.lane.b32.xlu2 %v1066_v16, %s1638_s25  ;;  %v982_v11 = vmul.f32 %v981_v63, %v1706_v32  ;;  %v664_v16 = vmul.f32 %v663_v8, %v1706_v32  ;;  %v793_v63 = vld [vmem:[#allocation8 + $0x3] ss:$8 sm:$0x3] }
  0xea   :  { %v468_v38 = vpop.permute.xlu0 %467  ;;  %v803_v8 = vperm.slane %v793_v63, 1 }
  0xeb   :  { %v478_v60 = vpop.permute.xlu1 %477  ;;  %v1979_v14 = vpop.permute.xlu2 %745  ;;  %v469_v37 = vrot.slane %v468_v38, 6  ;;  %v1003_v23 = vadd.f32 %v1001_v18, %v982_v11 }
  0xec   :  { %v479_v35 = vrot.slane %v478_v60, 6  ;;  %v747_v34 = vrot.slane %v1979_v14, 2  ;;  %v804_v18 = vrot.slane %v803_v8, 6  ;;  %v510_v8 = vstv %s1435_s18 }
  0xed   :  { %v470_v17 = vsel %vm320_vm11, %v469_v37, %v468_v38 }
  0xee   :  { %v480_v40 = vsel %vm320_vm11, %v479_v35, %v478_v60  ;;  %v1985_v43 = vadd.f32 %v470_v17, %v452_v22  ;;  %v748_v45 = vsel %vm277_vm9, %v1979_v14, %v747_v34  ;;  %v574_v34 = vstv %s1442_s27 }
  0xef   :  { %v482_v42 = vadd.f32 %v480_v40, %v462_v39 }
  0xf0   :  { %336 = vrot.lane.b32.xlu0 %v333_v44, %s1635_s17 }
  0xf1   :  { %486 = vrot.lane.b32.xlu2 %v482_v42, %s1635_s17 }
  0xf2   :  { %v1993_v52 = vpop.permute.xlu0 %497 }
  0xf3   :  { %v1989_v48 = vpop.permute.xlu1 %517  ;;  %v1991_v49 = vpop.permute.xlu2 %1058 }
  0xf4   :  { %v1060_v38 = vrot.slane %v1991_v49, 2 }
  0xf8   :  { %1234 = vrot.lane.b32.xlu0 %v1232_v54, %s1638_s25 }
  0xf9   :  { %1088 = vrot.lane.b32.xlu2 %v1086_v53, %s1637_s24  ;;  %v1061_v53 = vsel %vm277_vm9, %v1991_v49, %v1060_v38  ;;  %v888_v38 = vstv %s1470_s28 }
  0xfa   :  { %v686_v59 = vpop.permute.xlu0 %685 }
  0xfb   :  { %v706_v55 = vpop.permute.xlu1 %705  ;;  %v1999_v56 = vpop.permute.xlu2 %1098  ;;  %v687_v1 = vrot.slane %v686_v59, 6 }
  0xfc   :  { %v707_v13 = vrot.slane %v706_v55, 6  ;;  %v1100_v54 = vrot.slane %v1999_v56, 6 }
  0xfd   :  { %v688_v15 = vsel %vm211_vm6, %v687_v1, %v686_v59 }
  0xfe   :  { %v690_v22 = vadd.f32 %v688_v15, %v668_v3  ;;  %v708_v24 = vsel %vm233_vm7, %v707_v13, %v706_v55  ;;  %v1101_v49 = vsel %vm320_vm11, %v1100_v54, %v1999_v56  ;;  %v507_v13 = vmul.f32 %v506_v51, %v1706_v32  ;;  %v1530_v51 = vld [vmem:[#allocation2 + $0x2] sm:$0x3f] }
 0x100   :  { %1254 = vrot.lane.b32.xlu0 %v1252_v36, %s1637_s24  ;;  %v710_v30 = vadd.f32 %v708_v24, %v690_v22  ;;  %v868_v24 = vstv %s1468_s26  ;;  %s1649_s26 = smov [#allocation11]  }
 0x102   :  { %v726_v10 = vpop.permute.xlu0 %725 }
 0x103   :  { %v1019_v2 = vpop.permute.xlu1 %1018  ;;  %v675_v4 = vpop.permute.xlu2 %674  ;;  %v727_v21 = vrot.slane %v726_v10, 6 }
 0x104   :  { %v676_v9 = vrot.slane %v675_v4, 2  ;;  %v1020_v19 = vrot.slane %v1019_v2, 6 }
 0x105   :  { %v728_v6 = vsel %vm266_vm12, %v727_v21, %v726_v10 }
 0x106   :  { %v677_v20 = vsel %vm211_vm6, %v675_v4, %v676_v9  ;;  %v1021_v28 = vsel %vm233_vm7, %v1020_v19, %v1019_v2  ;;  %v730_v44 = vadd.f32 %v728_v6, %v710_v30  ;;  %v519_v2 = vrot.slane %v1989_v48, 2  ;;  %v2066_v6 = vld [vmem:[#allocation2] sm:$0x3f] }
 0x107   :  { %v679_v25 = vadd.f32 %v677_v20, %v664_v16  ;;  %v1023_v37 = vadd.f32 %v1021_v28, %v1003_v23  ;;  %v848_v9 = vstv %s1466_s23  ;;  %v554_v20 = vstv %s2031_s0  ;;  %s1646_s23 = smov 122   ;;  %s1647_s0 = smov 127  }
 0x108   :  { %1118 = vrot.lane.b32.xlu0 %v1117_v12, %s1640_s19  ;;  %v750_v61 = vadd.f32 %v748_v45, %v730_v44  ;;  %v849_v11 = vmul.f32 %v848_v9, %v1708_v33  ;;  %v520_v56 = vsel %vm211_vm6, %v1989_v48, %v519_v2  ;;  %v802_v12 = vperm.slane %v793_v63, 0  ;;  %s1462_s19 = sld [smem:[#allocation10 + $0x4]] }
 0x109   :  { %v522_v21 = vadd.f32 %v520_v56, %v507_v13  ;;  %v555_v48 = vmul.f32 %v554_v20, %v1708_v33  ;;  %v889_v30 = vmul.f32 %v888_v38, %v1728_v50  ;;  %v594_v44 = vstv %s1444_s30 }
 0x10a   :  { %v1039_v60 = vpop.permute.xlu0 %1038  ;;  %v805_v23 = vsel %vm159_vm0, %v802_v12, %v804_v18  ;;  %v614_v63 = vstv %s1446_s9 }
 0x10b   :  { %v767_v26 = vpop.permute.xlu1 %766  ;;  %v696_v27 = vpop.permute.xlu2 %695  ;;  %v1040_v35 = vrot.slane %v1039_v60, 6  ;;  %v615_v2 = vmul.f32 %v614_v63, %v1736_v57 }
 0x10c   :  { %v697_v31 = vrot.slane %v696_v27, 6  ;;  %v768_v40 = vrot.slane %v767_v26, 6 }
 0x10d   :  { %v1041_v17 = vsel %vm266_vm12, %v1040_v35, %v1039_v60  ;;  %v575_v35 = vmul.f32 %v574_v34, %v1728_v50 }
 0x10e   :  { %v698_v39 = vsel %vm233_vm7, %v697_v31, %v696_v27  ;;  %v1043_v47 = vadd.f32 %v1041_v17, %v1023_v37  ;;  %v769_v55 = vsel %vm298_vm10, %v768_v40, %v767_v26  ;;  %v869_v26 = vmul.f32 %v868_v24, %v1708_v33  ;;  %v1531_v24 = vld [vmem:[#allocation3] sm:$0x3f] }
 0x10f   :  { %v2020_v42 = vadd.f32 %v698_v39, %v679_v25  ;;  %v771_v4 = vadd.f32 %v769_v55, %v750_v61  ;;  %v828_v31 = vstv %s1464_s2  ;;  %v1141_v40 = vstv %s1492_s29  ;;  %s1390_s2 = sshll.u32 %s1649_s26, 4  ;;  %s1392_s29 = sshll.u32 %s2273_s3, 4  ;;  %s1391_s2 = int_to_ptr.vmem [resolvable:$true] %s1390_s2  ;;  %s1393_s29 = int_to_ptr.hbm [resolvable:$true] %s1392_s29 }
 0x110   :  { %v1063_v1 = vadd.f32 %v1061_v53, %v1043_v47  ;;  %851 = vrot.lane.b32.xlu0 %v849_v11, %s1633_s6  ;;  %v829_v33 = vmul.f32 %v2066_v6, %v828_v31  ;;  %v1142_v45 = vmul.f32 %v2066_v6, %v1141_v40  ;;  %v595_v47 = vmul.f32 %v594_v44, %v1728_v50 }
 0x111   :  { %v908_v53 = vstv %s1472_s4  ;;  %v1161_v61 = vstv %s1494_s7  ;;  %v511_v11 = vmul.f32 %v2066_v6, %v510_v8 }
 0x112   :  { %v787_v62 = vpop.permute.xlu0 %786  ;;  %v909_v54 = vmul.f32 %v908_v53, %v1736_v57  ;;  %v499_v53 = vrot.slane %v1993_v52, 6 }
 0x113   :  { %v1079_v58 = vpop.permute.xlu1 %1078  ;;  %v2029_v59 = vpop.permute.xlu2 %1154  ;;  %v788_v14 = vrot.slane %v787_v62, 6 }
 0x114   :  { %v1080_v36 = vrot.slane %v1079_v58, 6 }
 0x115   :  { %v789_v7 = vsel %vm320_vm11, %v788_v14, %v787_v62 }
 0x116   :  { %v1081_v5 = vsel %vm298_vm10, %v1080_v36, %v1079_v58  ;;  %v791_v10 = vadd.f32 %v789_v7, %v771_v4  ;;  %v1181_v7 = vstv %s1496_s11 }
 0x117   :  { %v1083_v29 = vadd.f32 %v1081_v5, %v1063_v1  ;;  %v1162_v1 = vmul.f32 %v1530_v51, %v1161_v61 }
 0x118   :  { %795 = vrot.lane.b32.xlu1 %v791_v10, %s1635_s17  ;;  %871 = vrot.lane.b32.xlu0 %v869_v26, %s1632_s5 }
 0x119   :  { %v1103_v3 = vadd.f32 %v1101_v49, %v1083_v29  ;;  %v928_v49 = vstv %s1474_s10 }
 0x11a   :  { %v538_v19 = vpop.permute.xlu0 %537  ;;  %v929_v4 = vmul.f32 %v928_v49, %v1736_v57  ;;  %v1182_v57 = vmul.f32 %v1530_v51, %v1181_v7  ;;  %v501_v7 = vsel %vm500_vm13, %v499_v53, %v1993_v52  ;;  %vm1307_vm13 = vcmask 1042433  }
 0x11b   :  { %v2045_v15 = vpop.permute.xlu1 %547  ;;  %v2047_v16 = vpop.permute.xlu2 %881  ;;  %1107 = vrot.lane.b32.xlu2 %v1103_v3, %s1635_s17  ;;  %v539_v32 = vrot.slane %v538_v19, 6 }
 0x11c   :  { %v549_v10 = vrot.slane %v2045_v15, 6 }
 0x11d   :  { %v540_v22 = vsel %vm233_vm7, %v539_v32, %v538_v19 }
 0x11e   :  { %v2054_v25 = vadd.f32 %v540_v22, %v522_v21  ;;  %v550_v56 = vsel %vm233_vm7, %v549_v10, %v2045_v15 }
 0x120   :  { %806 = vrot.lane.b32.xlu1 %v805_v23, %s1638_s25  ;;  %891 = vrot.lane.b32.xlu0 %v889_v30, %s1635_s17 }
 0x122   :  { %v2064_v60 = vpop.permute.xlu0 %841 }
 0x123   :  { %v2059_v27 = vpop.permute.xlu1 %567  ;;  %v2061_v28 = vpop.permute.xlu2 %607  ;;  %557 = vrot.lane.b32.xlu2 %v555_v48, %s1632_s5 }
 0x124   :  { %v569_v13 = vrot.slane %v2059_v27, 6  ;;  %v609_v23 = vrot.slane %v2061_v28, 6 }
 0x128   :  { %831 = vrot.lane.b32.xlu1 %v829_v33, %s1634_s8  ;;  %911 = vrot.lane.b32.xlu0 %v909_v54, %s1638_s25 }
 0x12a   :  { %v2078_v17 = vpop.permute.xlu0 %861 }
 0x12b   :  { %v2073_v39 = vpop.permute.xlu1 %988  ;;  %v2075_v37 = vpop.permute.xlu2 %1028  ;;  %577 = vrot.lane.b32.xlu2 %v575_v35, %s1635_s17  ;;  %v843_v35 = vrot.slane %v2064_v60, 6 }
 0x130   :  { %1144 = vrot.lane.b32.xlu1 %v1142_v45, %s1634_s8  ;;  %931 = vrot.lane.b32.xlu0 %v929_v4, %s1637_s24  ;;  %s1498_s8 = sld [smem:[#allocation10 + $0x3e]]  ;;  %v634_v45 = vld [vmem:[#allocation8 + $0x2] ss:$8 sm:$0x3] }
 0x132   :  { %v588_v62 = vpop.permute.xlu0 %587 }
 0x133   :  { %v716_v55 = vpop.permute.xlu1 %715  ;;  %v2085_v58 = vpop.permute.xlu2 %756  ;;  %597 = vrot.lane.b32.xlu2 %v595_v47, %s1638_s25  ;;  %v589_v12 = vrot.slane %v588_v62, 2  ;;  %v1221_v47 = vstv %s2116_s12 }
 0x134   :  { %v717_v36 = vrot.slane %v716_v55, 6 }
 0x135   :  { %v590_v48 = vsel %vm277_vm9, %v588_v62, %v589_v12  ;;  %v863_v62 = vrot.slane %v2078_v17, 6 }
 0x136   :  { %v718_v50 = vsel %vm254_vm8, %v717_v36, %v716_v55  ;;  %v1201_v32 = vstv %s1498_s8 }
 0x137   :  { %v720_v14 = vadd.f32 %v718_v50, %v2020_v42  ;;  %v529_v42 = vrot.slane %v1928_v41, 2  ;;  %v1202_v26 = vmul.f32 %v1531_v24, %v1201_v32  ;;  %v864_v10 = vsel %vm233_vm7, %v863_v62, %v2078_v17 }
 0x138   :  { %1164 = vrot.lane.b32.xlu1 %v1162_v1, %s1633_s6  ;;  %s2109_s6 = sld [smem:[#allocation10 + $0xb]]  ;;  %v644_v1 = vperm.slane %v634_v45, 1 }
 0x139   :  { %v530_v3 = vsel %vm211_vm6, %v1928_v41, %v529_v42  ;;  %v570_v41 = vsel %vm266_vm12, %v569_v13, %v2059_v27  ;;  %v610_v27 = vsel %vm298_vm10, %v609_v23, %v2061_v28  ;;  %v844_v28 = vsel %vm211_vm6, %v843_v35, %v2064_v60 }
 0x13a   :  { %v2100_v9 = vpop.permute.xlu0 %1008  ;;  %v532_v18 = vadd.f32 %v530_v3, %v511_v11  ;;  %v883_v42 = vrot.slane %v2047_v16, 6  ;;  %v645_v11 = vrot.slane %v644_v1, 6 }
 0x13b   :  { %v2093_v5 = vpop.permute.xlu1 %1174  ;;  %v2095_v29 = vpop.permute.xlu2 %1214  ;;  %617 = vrot.lane.b32.xlu2 %v615_v2, %s1637_s24 }
 0x13c   :  { %v552_v22 = vadd.f32 %v550_v56, %v532_v18  ;;  %v884_v12 = vsel %vm266_vm12, %v883_v42, %v2047_v16  ;;  %v1176_v62 = vrot.slane %v2093_v5, 6 }
 0x13e   :  { %v572_v31 = vadd.f32 %v570_v41, %v552_v22  ;;  %v824_v30 = vstv %s2109_s6 }
 0x13f   :  { %v825_v36 = vmul.f32 %v2066_v6, %v824_v30  ;;  %v1156_v30 = vrot.slane %v2029_v59, 6 }
 0x140   :  { %1184 = vrot.lane.b32.xlu1 %v1182_v57, %s1632_s5  ;;  %v592_v38 = vadd.f32 %v590_v48, %v572_v31  ;;  %s2131_s5 = sld [smem:[#allocation10 + $0x5a]]  ;;  %v643_v57 = vperm.slane %v634_v45, 0  ;;  %v990_v45 = vrot.slane %v2073_v39, 2 }
 0x141   :  { %v846_v8 = vadd.f32 %v844_v28, %v825_v36 }
 0x142   :  { %v736_v21 = vpop.permute.xlu0 %735  ;;  %v612_v63 = vadd.f32 %v610_v27, %v592_v38  ;;  %v646_v32 = vsel %vm159_vm0, %v643_v57, %v645_v11  ;;  %v991_v28 = vsel %vm211_vm6, %v2073_v39, %v990_v45 }
 0x143   :  { %v2112_v19 = vpop.permute.xlu1 %901  ;;  %v2114_v20 = vpop.permute.xlu2 %1068  ;;  %v737_v15 = vrot.slane %v736_v21, 2  ;;  %v866_v56 = vadd.f32 %v864_v10, %v846_v8  ;;  %v1216_v10 = vrot.slane %v2095_v29, 2 }
 0x144   :  { %v903_v13 = vrot.slane %v2112_v19, 2 }
 0x145   :  { %v738_v34 = vsel %vm277_vm9, %v736_v21, %v737_v15  ;;  %v948_v21 = vld [vmem:[#allocation8 + $0x4] ss:$8 sm:$0x3]  ;;  %v886_v15 = vadd.f32 %v884_v12, %v866_v56  ;;  %v1217_v56 = vsel %vm277_vm9, %v2095_v29, %v1216_v10 }
 0x146   :  { %v2123_v33 = vadd.f32 %v738_v34, %v720_v14  ;;  %v1532_v14 = vld [vmem:[#allocation3 + $0x2] sm:$0x3f]  ;;  %v958_v17 = vperm.slane %v948_v21, 1  ;;  %v904_v22 = vsel %vm277_vm9, %v2112_v19, %v903_v13  ;;  %v957_v48 = vperm.slane %v948_v21, 0 }
 0x147   :  { %v1222_v2 = vmul.f32 %v1532_v14, %v1221_v47  ;;  %v906_v24 = vadd.f32 %v904_v22, %v886_v15  ;;  %v349_v47 = vrot.slane %v1800_v0, 6  ;;  %v1261_v13 = vld [vmem:[#allocation8 + $0x6] ss:$8 sm:$0x3] }
 0x148   :  { %1204 = vrot.lane.b32.xlu1 %v1202_v26, %s1635_s17  ;;  %v959_v16 = vrot.slane %v958_v17, 6 }
 0x149   :  { %v351_v1 = vsel %vm350_vm14, %v349_v47, %v1800_v0 }
 0x14a   :  { %v2134_v61 = vpop.permute.xlu0 %1194  ;;  %v960_v19 = vsel %vm159_vm0, %v957_v48, %v959_v16 }
 0x14b   :  { %v628_v40 = vpop.permute.xlu1 %627  ;;  %v487_v44 = vpop.permute.xlu2 %486 }
 0x14c   :  { %v629_v54 = vrot.slane %v628_v40, 6  ;;  %v488_v55 = vrot.slane %v487_v44, 2 }
 0x14e   :  { %v630_v50 = vsel %vm320_vm11, %v629_v54, %v628_v40  ;;  %v489_v51 = vsel %vm277_vm9, %v487_v44, %v488_v55  ;;  %v1137_v40 = vstv %s1491_s13  ;;  %v1157_v54 = vsel %vm211_vm6, %v1156_v30, %v2029_v59 }
 0x14f   :  { %v632_v49 = vadd.f32 %v630_v50, %v612_v63  ;;  %v491_v4 = vadd.f32 %v489_v51, %v1985_v43  ;;  %v1241_v43 = vstv %s2131_s5  ;;  %v1138_v53 = vmul.f32 %v2066_v6, %v1137_v40 }
 0x150   :  { %1224 = vrot.lane.b32.xlu1 %v1222_v2, %s1638_s25  ;;  %v1242_v41 = vmul.f32 %v1532_v14, %v1241_v43  ;;  %s1476_s25 = sld [smem:[#allocation10 + $0x5]]  ;;  %v1010_v63 = vrot.slane %v2100_v9, 6 }
 0x151   :  { %636 = vrot.lane.b32.xlu2 %v632_v49, %s1635_s17  ;;  %v2146_v60 = vmul.f32 %v501_v7, %v491_v4  ;;  %v1159_v14 = vadd.f32 %v1157_v54, %v1138_v53  ;;  %v1030_v49 = vrot.slane %v2075_v37, 6  ;;  %v1177_v4 = vsel %vm233_vm7, %v1176_v62, %v2093_v5 }
 0x152   :  { %v922_v52 = vpop.permute.xlu0 %921  ;;  %v1011_v39 = vsel %vm233_vm7, %v1010_v63, %v2100_v9  ;;  %v1196_v7 = vrot.slane %v2134_v61, 6  ;;  %v758_v54 = vrot.slane %v2085_v58, 6 }
 0x153   :  { %v2152_v3 = vpop.permute.xlu1 %1048  ;;  %v923_v18 = vrot.slane %v922_v52, 6  ;;  %v1179_v42 = vadd.f32 %v1177_v4, %v1159_v14  ;;  %v1089_v43 = vpop.permute.xlu2 %1088 }
 0x154   :  { %v1197_v11 = vsel %vm266_vm12, %v1196_v7, %v2134_v61  ;;  %v1050_v5 = vrot.slane %v2152_v3, 2  ;;  %v1090_v48 = vrot.slane %v1089_v43, 6  ;;  %vm1301_vm12 = vcmask 1040384  }
 0x155   :  { %v924_v23 = vsel %vm298_vm10, %v923_v18, %v922_v52  ;;  %v1271_v52 = vperm.slane %v1261_v13, 1  ;;  %v1199_v12 = vadd.f32 %v1197_v11, %v1179_v42 }
 0x156   :  { %v926_v35 = vadd.f32 %v924_v23, %v906_v24  ;;  %v977_v44 = vstv %s1476_s25 }
 0x157   :  { %v978_v55 = vmul.f32 %v2066_v6, %v977_v44  ;;  %v1272_v21 = vrot.slane %v1271_v52, 6  ;;  %v1219_v15 = vadd.f32 %v1217_v56, %v1199_v12 }
 0x158   :  { %1244 = vrot.lane.b32.xlu1 %v1242_v41, %s1637_s24  ;;  %s1642_s24 = smov 81   ;;  %v1051_v41 = vsel %vm277_vm9, %v2152_v3, %v1050_v5 }
 0x159   :  { %647 = vrot.lane.b32.xlu2 %v646_v32, %s1641_s14  ;;  %v993_v2 = vadd.f32 %v991_v28, %v978_v55  ;;  %v1070_v32 = vrot.slane %v2114_v20, 6  ;;  %v759_v28 = vsel %vm298_vm10, %v758_v54, %v2085_v58 }
 0x15a   :  { %v2163_v34 = vpop.permute.xlu0 %776 }
 0x15b   :  { %v942_v26 = vpop.permute.xlu1 %941  ;;  %v1013_v0 = vadd.f32 %v1011_v39, %v993_v2  ;;  %v1071_v29 = vsel %vm298_vm10, %v1070_v32, %v2114_v20 }
 0x15c   :  { %v943_v31 = vrot.slane %v942_v26, 6 }
 0x15e   :  { %v944_v38 = vsel %vm320_vm11, %v943_v31, %v942_v26 }
 0x15f   :  { %v946_v27 = vadd.f32 %v944_v38, %v926_v35 }
 0x161   :  { %950 = vrot.lane.b32.xlu0 %v946_v27, %s1635_s17  ;;  %961 = vrot.lane.b32.xlu2 %v960_v19, %s1642_s24  ;;  %v1091_v19 = vsel %vm320_vm11, %v1090_v48, %v1089_v43 }
 0x162   :  { %v337_v36 = vpop.permute.xlu0 %336 }
 0x163   :  { %v338_v50 = vrot.slane %v337_v36, 2 }
 0x165   :  { %v339_v51 = vsel %vm277_vm9, %v337_v36, %v338_v50  ;;  %v778_v36 = vrot.slane %v2163_v34, 6 }
 0x166   :  { %v341_v59 = vadd.f32 %v339_v51, %v1935_v46  ;;  %v1031_v46 = vsel %vm254_vm8, %v1030_v49, %v2075_v37  ;;  %v1270_v37 = vperm.slane %v1261_v13, 0  ;;  %v761_v51 = vadd.f32 %v759_v28, %v2123_v33 }
 0x167   :  { %v1033_v18 = vadd.f32 %v1031_v46, %v1013_v0  ;;  %v779_v50 = vsel %vm320_vm11, %v778_v36, %v2163_v34 }
 0x168   :  { %v2189_v8 = vmul.f32 %v351_v1, %v341_v59  ;;  %v1273_v17 = vsel %vm159_vm0, %v1270_v37, %v1272_v21  ;;  %v781_v14 = vadd.f32 %v779_v50, %v761_v51  ;;  %v1133_v51 = vstv %s1490_s22 }
 0x169   :  { %v1053_v22 = vadd.f32 %v1051_v41, %v1033_v18  ;;  %1274 = vrot.lane.b32.xlu2 %v1273_v17, %s1643_s15 }
 0x16a   :  { %v1235_v57 = vpop.permute.xlu0 %1234 }
 0x16b   :  { %v1236_v9 = vrot.slane %v1235_v57, 6  ;;  %v1073_v35 = vadd.f32 %v1071_v29, %v1053_v22 }
 0x16d   :  { %v1237_v61 = vsel %vm298_vm10, %v1236_v9, %v1235_v57  ;;  %v1093_v30 = vadd.f32 %v1091_v19, %v1073_v35 }
 0x16e   :  { %v1239_v26 = vadd.f32 %v1237_v61, %v1219_v15 }
 0x172   :  { %v1255_v23 = vpop.permute.xlu0 %1254 }
 0x173   :  { %v1256_v16 = vrot.slane %v1255_v23, 6 }
 0x175   :  { %v1108_v24 = vpop.permute.xlu2 %1107  ;;  %v1257_v3 = vsel %vm320_vm11, %v1256_v16, %v1255_v23 }
 0x176   :  { %v1109_v31 = vrot.slane %v1108_v24, 2  ;;  %v1259_v38 = vadd.f32 %v1257_v3, %v1239_v26 }
 0x178   :  { %1263 = vrot.lane.b32.xlu0 %v1259_v38, %s1635_s17  ;;  %v1110_v27 = vsel %vm277_vm9, %v1108_v24, %v1109_v31  ;;  %s1645_s17 = smov 126  }
 0x179   :  { %v1112_v20 = vadd.f32 %v1110_v27, %v1093_v30 }
 0x17a   :  { %v1119_v40 = vpop.permute.xlu0 %1118 }
 0x17b   :  { %v1120_v44 = vrot.slane %v1119_v40, 6 }
 0x17d   :  { %v1122_v45 = vsel %vm1121_vm15, %v1120_v44, %v1119_v40  ;;  %v558_v53 = vpop.permute.xlu2 %557 }
 0x17e   :  { %v1124_v47 = vmul.f32 %v1122_v45, %v1112_v20  ;;  %v559_v10 = vrot.slane %v558_v53, 6 }
 0x180   :  { %1126 = vrot.lane.b32.xlu0 %v1124_v47, %s1644_s16  ;;  %v560_v33 = vsel %vm254_vm8, %v559_v10, %v558_v53 }
 0x181   :  { %v562_v13 = vadd.f32 %v560_v33, %v2054_v25  ;;  %v820_v25 = vstv %s1462_s19 }
 0x182   :  { %v852_v58 = vpop.permute.xlu0 %851  ;;  %v821_v48 = vmul.f32 %v2066_v6, %v820_v25 }
 0x183   :  { %v853_v16 = vrot.slane %v852_v58, 6 }
 0x185   :  { %v578_v62 = vpop.permute.xlu2 %577  ;;  %v854_v35 = vsel %vm233_vm7, %v853_v16, %v852_v58 }
 0x186   :  { %v579_v0 = vrot.slane %v578_v62, 2 }
 0x188   :  { %v580_v5 = vsel %vm277_vm9, %v578_v62, %v579_v0 }
 0x189   :  { %v582_v56 = vadd.f32 %v580_v5, %v562_v13 }
 0x18a   :  { %v796_v55 = vpop.permute.xlu1 %795  ;;  %v872_v11 = vpop.permute.xlu0 %871 }
 0x18b   :  { %v797_v63 = vrot.slane %v796_v55, 2  ;;  %v873_v38 = vrot.slane %v872_v11, 6 }
 0x18d   :  { %v798_v1 = vsel %vm277_vm9, %v796_v55, %v797_v63  ;;  %v598_v7 = vpop.permute.xlu2 %597  ;;  %v874_v27 = vsel %vm254_vm8, %v873_v38, %v872_v11 }
 0x18e   :  { %v800_v49 = vadd.f32 %v798_v1, %v781_v14  ;;  %v599_v57 = vrot.slane %v598_v7, 2 }
 0x190   :  { %v600_v9 = vsel %vm298_vm10, %v598_v7, %v599_v57 }
 0x191   :  { %v602_v18 = vadd.f32 %v600_v9, %v582_v56 }
 0x192   :  { %v807_v2 = vpop.permute.xlu1 %806  ;;  %v892_v22 = vpop.permute.xlu0 %891 }
 0x193   :  { %v808_v59 = vrot.slane %v807_v2, 6  ;;  %v893_v30 = vrot.slane %v892_v22, 2 }
 0x195   :  { %v809_v4 = vsel %vm298_vm10, %v808_v59, %v807_v2  ;;  %v618_v42 = vpop.permute.xlu2 %617  ;;  %v894_v20 = vsel %vm277_vm9, %v892_v22, %v893_v30 }
 0x196   :  { %v811_v39 = vmul.f32 %v809_v4, %v800_v49  ;;  %v619_v43 = vrot.slane %v618_v42, 6  ;;  %v1134_v49 = vmul.f32 %v2066_v6, %v1133_v51 }
 0x198   :  { %813 = vrot.lane.b32.xlu1 %v811_v39, %s1645_s17  ;;  %v620_v12 = vsel %vm320_vm11, %v619_v43, %v618_v42 }
 0x199   :  { %v622_v37 = vadd.f32 %v620_v12, %v602_v18 }
 0x19a   :  { %v832_v34 = vpop.permute.xlu1 %831  ;;  %v912_v31 = vpop.permute.xlu0 %911 }
 0x19b   :  { %v833_v29 = vrot.slane %v832_v34, 2  ;;  %v913_v45 = vrot.slane %v912_v31, 6 }
 0x19d   :  { %v834_v24 = vsel %vm211_vm6, %v832_v34, %v833_v29  ;;  %v914_v54 = vsel %vm298_vm10, %v913_v45, %v912_v31  ;;  %v1310_v29 = vld [vmem:[#allocation4] sm:$0xff] }
 0x19e   :  { %v836_v3 = vadd.f32 %v834_v24, %v821_v48  ;;  %v1311_v48 = vld [vmem:[#allocation4 + $0x8] sm:$0xff]  ;;  %1326 = vst [vmem:[#allocation1] ss:$2 sm:$0xff] %v1310_v29 }
 0x19f   :  { %1330 = vst [vmem:[#allocation1 + $0x10] ss:$2 sm:$0xff] %v1311_v48 }
 0x1a0   :  { %v856_v19 = vadd.f32 %v854_v35, %v836_v3 }
 0x1a2   :  { %v1145_v41 = vpop.permute.xlu1 %1144  ;;  %v876_v44 = vadd.f32 %v874_v27, %v856_v19  ;;  %v932_v47 = vpop.permute.xlu0 %931 }
 0x1a3   :  { %v933_v55 = vrot.slane %v932_v47, 6  ;;  %v1146_v1 = vrot.slane %v1145_v41, 2 }
 0x1a4   :  { %v896_v53 = vadd.f32 %v894_v20, %v876_v44 }
 0x1a5   :  { %v934_v62 = vsel %vm320_vm11, %v933_v55, %v932_v47  ;;  %v1147_v7 = vsel %vm211_vm6, %v1145_v41, %v1146_v1  ;;  %vm1277_vm6 = vcmask 678912   ;;  %v1328_v16 = vld.sshfl [vmem:[#allocation1 + $0x8] sm:$0xff pattern:$0x75316420] }
 0x1a6   :  { %v916_v36 = vadd.f32 %v914_v54, %v896_v53  ;;  %v1149_v0 = vadd.f32 %v1147_v7, %v1134_v49  ;;  %v1327_v38 = vld.sshfl [vmem:[#allocation1] sm:$0xff pattern:$0x75316420]  ;;  %v1331_v44 = vld.sshfl [vmem:[#allocation1 + $0x10] sm:$0xff pattern:$0x75316420] }
 0x1a8   :  { %v936_v14 = vadd.f32 %v934_v62, %v916_v36 }
 0x1aa   :  { %v1165_v26 = vpop.permute.xlu1 %1164 }
 0x1ab   :  { %v637_v46 = vpop.permute.xlu2 %636  ;;  %v1166_v58 = vrot.slane %v1165_v26, 6 }
 0x1ac   :  { %v638_v52 = vrot.slane %v637_v46, 2 }
 0x1ad   :  { %v1167_v33 = vsel %vm233_vm7, %v1166_v58, %v1165_v26  ;;  %vm658_vm7 = vcmask 1031168  }
 0x1ae   :  { %v639_v32 = vsel %vm277_vm9, %v637_v46, %v638_v52  ;;  %v1169_v46 = vadd.f32 %v1167_v33, %v1149_v0 }
 0x1af   :  { %v641_v17 = vadd.f32 %v639_v32, %v622_v37 }
 0x1b2   :  { %v1185_v40 = vpop.permute.xlu1 %1184 }
 0x1b3   :  { %v648_v21 = vpop.permute.xlu2 %647  ;;  %v1186_v57 = vrot.slane %v1185_v40, 6 }
 0x1b4   :  { %v649_v61 = vrot.slane %v648_v21, 6 }
 0x1b5   :  { %v1187_v11 = vsel %vm254_vm8, %v1186_v57, %v1185_v40  ;;  %vm972_vm8 = vcmask 1014784   ;;  %v1332_v40 = vld.sshfl [vmem:[#allocation1 + $0x18] sm:$0xff pattern:$0x75316420] }
 0x1b6   :  { %v651_v15 = vsel %vm650_vm4, %v649_v61, %v648_v21  ;;  %v1189_v6 = vadd.f32 %v1187_v11, %v1169_v46 }
 0x1b7   :  { %v653_v23 = vmul.f32 %v651_v15, %v641_v17 }
 0x1b9   :  { %655 = vrot.lane.b32.xlu1 %v653_v23, %s1645_s17 }
 0x1ba   :  { %v1205_v63 = vpop.permute.xlu1 %1204 }
 0x1bb   :  { %v962_v28 = vpop.permute.xlu2 %961  ;;  %v1206_v5 = vrot.slane %v1205_v63, 2 }
 0x1bc   :  { %v963_v50 = vrot.slane %v962_v28, 6 }
 0x1bd   :  { %v1207_v43 = vsel %vm277_vm9, %v1205_v63, %v1206_v5 }
 0x1be   :  { %v965_v39 = vsel %vm964_vm5, %v963_v50, %v962_v28  ;;  %v1209_v52 = vadd.f32 %v1207_v43, %v1189_v6 }
 0x1c2   :  { %v1225_v34 = vpop.permute.xlu1 %1224 }
 0x1c3   :  { %v1226_v13 = vrot.slane %v1225_v34, 6  ;;  %v1275_v18 = vpop.permute.xlu2 %1274 }
 0x1c4   :  { %v1276_v37 = vrot.slane %v1275_v18, 6 }
 0x1c5   :  { %v1227_v56 = vsel %vm298_vm10, %v1226_v13, %v1225_v34  ;;  %vm1293_vm10 = vcmask 1039360  }
 0x1c6   :  { %v1229_v32 = vadd.f32 %v1227_v56, %v1209_v52  ;;  %v1278_v15 = vsel %vm1277_vm6, %v1276_v37, %v1275_v18 }
 0x1ca   :  { %v1245_v9 = vpop.permute.xlu1 %1244 }
 0x1cb   :  { %v1246_v12 = vrot.slane %v1245_v9, 6 }
 0x1cd   :  { %v1247_v41 = vsel %vm320_vm11, %v1246_v12, %v1245_v9  ;;  %vm162_vm11 = vcmask 1042434  }
 0x1ce   :  { %v1249_v17 = vadd.f32 %v1247_v41, %v1229_v32 }
 0x1d3   :  { %v951_v2 = vpop.permute.xlu0 %950 }
 0x1d4   :  { %v952_v59 = vrot.slane %v951_v2, 2 }
 0x1d6   :  { %v953_v4 = vsel %vm277_vm9, %v951_v2, %v952_v59 }
 0x1d7   :  { %v955_v42 = vadd.f32 %v953_v4, %v936_v14 }
 0x1d9   :  { %v967_v10 = vmul.f32 %v965_v39, %v955_v42 }
 0x1db   :  { %969 = vrot.lane.b32.xlu2 %v967_v10, %s1644_s16 }
 0x1e3   :  { %1333 = vrot.lane.b32.xlu2 %v1327_v38, %s1631_s1 }
 0x1ea   :  { %v1264_v21 = vpop.permute.xlu0 %1263 }
 0x1eb   :  { %v1265_v61 = vrot.slane %v1264_v21, 2  ;;  %1339 = vrot.lane.b32.xlu2 %v1332_v40, %s1631_s1 }
 0x1ed   :  { %v1266_v22 = vsel %vm277_vm9, %v1264_v21, %v1265_v61  ;;  %vm1285_vm9 = vcmask 998400  }
 0x1ee   :  { %v1268_v23 = vadd.f32 %v1266_v22, %v1249_v17 }
 0x1f0   :  { %v1280_v25 = vmul.f32 %v1278_v15, %v1268_v23 }
 0x1f2   :  { %1282 = vrot.lane.b32.xlu0 %v1280_v25, %s1646_s23  ;;  %v1127_v24 = vpop.permute.xlu0 %1126 }
 0x1f3   :  { %v1128_v3 = vrot.slane %v1127_v24, 2 }
 0x1f5   :  { %v1129_v27 = vsel %vm972_vm8, %v1127_v24, %v1128_v3 }
 0x1fa   :  { %1335 = vrot.lane.b32.xlu0 %v1328_v16, %s1631_s1 }
 0x20a   :  { %v814_v26 = vpop.permute.xlu1 %813 }
 0x20b   :  { %v815_v31 = vrot.slane %v814_v26, 2 }
 0x20d   :  { %v816_v35 = vsel %vm658_vm7, %v814_v26, %v815_v31 }
 0x20e   :  { %v818_v19 = vadd.f32 %v816_v35, %v2146_v60 }
 0x210   :  { %v1131_v30 = vadd.f32 %v1129_v27, %v818_v19 }
 0x212   :  { %1290 = vrot.lane.b32.xlu1 %v1131_v30, %s1647_s0 }
 0x21a   :  { %1337 = vrot.lane.b32.xlu1 %v1331_v44, %s1631_s1  ;;  %s1648_s1 = smov 51  }
 0x22b   :  { %v656_v20 = vpop.permute.xlu1 %655 }
 0x22c   :  { %v657_v45 = vrot.slane %v656_v20, 2 }
 0x22e   :  { %v659_v47 = vsel %vm658_vm7, %v656_v20, %v657_v45 }
 0x22f   :  { %v661_v53 = vadd.f32 %v659_v47, %v2189_v8 }
 0x235   :  { %v970_v60 = vpop.permute.xlu2 %969 }
 0x236   :  { %v971_v55 = vrot.slane %v970_v60, 2 }
 0x238   :  { %v973_v28 = vsel %vm972_vm8, %v970_v60, %v971_v55 }
 0x239   :  { %v975_v50 = vadd.f32 %v973_v28, %v661_v53 }
 0x23d   :  { %v1334_v63 = vpop.permute.xlu2 %1333 }
 0x245   :  { %v1340_v33 = vpop.permute.xlu2 %1339 }
 0x264   :  { %v1283_v54 = vpop.permute.xlu0 %1282 }
 0x265   :  { %v1284_v36 = vrot.slane %v1283_v54, 2 }
 0x267   :  { %v1286_v62 = vsel %vm1285_vm9, %v1283_v54, %v1284_v36 }
 0x268   :  { %v1288_v14 = vadd.f32 %v1286_v62, %v975_v50 }
 0x26c   :  { %v1336_v39 = vpop.permute.xlu0 %1335 }
 0x26d   :  { %v1341_v34 = vsel %vm350_vm14, %v1334_v63, %v1336_v39 }
 0x284   :  { %v1291_v51 = vpop.permute.xlu1 %1290 }
 0x285   :  { %v1292_v1 = vrot.slane %v1291_v51, 2 }
 0x287   :  { %v1294_v2 = vsel %vm1293_vm10, %v1291_v51, %v1292_v1 }
 0x288   :  { %v1296_v59 = vadd.f32 %v1294_v2, %v1288_v14 }
 0x28a   :  { %v1298_v49 = vrot.slane %v1296_v59, 1  ;;  %v1299_v8 = vrot.slane %v1296_v59, 2  ;;  %v1300_v4 = vrot.slane %v1296_v59, 3 }
 0x28c   :  { %v1302_v7 = vsel %vm1301_vm12, %v1296_v59, %v1298_v49  ;;  %v1303_v58 = vsel %vm162_vm11, %v1299_v8, %v1300_v4  ;;  %v1305_v42 = vsel %vm168_vm2, %v1296_v59, %v1298_v49  ;;  %v1306_v10 = vsel %vm170_vm3, %v1299_v8, %v1300_v4  ;;  %v1338_v46 = vpop.permute.xlu1 %1337 }
 0x28d   :  { %v1304_v0 = vsel %vm159_vm0, %v1302_v7, %v1303_v58  ;;  %v1308_v57 = vsel %vm1307_vm13, %v1305_v42, %v1306_v10  ;;  %v1342_v52 = vsel %vm350_vm14, %v1338_v46, %v1340_v33  ;;  %vm1378_vm0 = vcmask 416768  }
 0x28e   :  { %v1312_v11 = vperm.slane %v1304_v0, 0  ;;  %v1313_v5 = vperm.slane %v1304_v0, 1  ;;  %v1314_v6 = vperm.slane %v1304_v0, 2  ;;  %v1309_v43 = vrot.slane %v1308_v57, 1 }
 0x290   :  { %v1350_v13 = vmul.f32 %v1341_v34, %v1313_v5  ;;  %v1351_v9 = vmul.f32 %v1336_v39, %v1314_v6  ;;  %v1315_v56 = vperm.slane %v1309_v43, 0  ;;  %v1316_v12 = vperm.slane %v1309_v43, 1 }
 0x291   :  { %v1349_v18 = vmul.f32 %v1334_v63, %v1312_v11  ;;  %v1317_v17 = vperm.slane %v1309_v43, 2 }
 0x292   :  { %v1361_v32 = vrot.slane %v1350_v13, 4  ;;  %1367 = vrot.lane.b32.xlu1 %v1351_v9, %s1648_s1  ;;  %v1353_v41 = vmul.f32 %v1342_v52, %v1316_v12  ;;  %v1352_v21 = vmul.f32 %v1338_v46, %v1315_v56 }
 0x293   :  { %v1354_v15 = vmul.f32 %v1340_v33, %v1317_v17 }
 0x294   :  { %v1363_v37 = vsel %vm73_vm1, %v1349_v18, %v1361_v32  ;;  %v1362_v61 = vrot.slane %v1353_v41, 4 }
 0x295   :  { %1365 = vrot.lane.b32.xlu0 %v1363_v37, %s1648_s1 }
 0x296   :  { %v1364_v22 = vsel %vm73_vm1, %v1352_v21, %v1362_v61 }
 0x297   :  { %1369 = vrot.lane.b32.xlu2 %v1364_v22, %s1648_s1 }
 0x29d   :  { %1371 = vrot.lane.b32.xlu0 %v1354_v15, %s1648_s1 }
 0x2f1   :  { %v1370_v26 = vpop.permute.xlu2 %1369 }
 0x2f2   :  { %v1375_v31 = vrot.slane %v1370_v26, 4 }
 0x304   :  { %v1368_v23 = vpop.permute.xlu1 %1367 }
 0x305   :  { %v1374_v29 = vrot.slane %v1368_v23, 4 }
 0x307   :  { %v1366_v25 = vpop.permute.xlu0 %1365 }
 0x308   :  { %v1373_v48 = vrot.slane %v1366_v25, 4 }
 0x30a   :  { %v1377_v16 = vsel %vm73_vm1, %v1373_v48, %v1374_v29 }
 0x30b   :  { %v1379_v24 = vsel %vm1378_vm0, %v1366_v25, %v1377_v16 }
 0x30c   :  { %1384 = vst [vmem:[#allocation11] sm:$0xff] %v1379_v24 }
 0x30f   :  { %v1372_v3 = vpop.permute.xlu0 %1371 }
 0x310   :  { %v1376_v35 = vrot.slane %v1372_v3, 4 }
 0x312   :  { %v1380_v38 = vsel %vm73_vm1, %v1375_v31, %v1376_v35 }
 0x313   :  { %v1381_v19 = vsel %vm1378_vm0, %v1370_v26, %v1380_v38 }
 0x314   :  { %1385 = vst [vmem:[#allocation11 + $0x8] sm:$0xff] %v1381_v19 }
 0x315   :  { %1398 = dma.vmem_to_hbm [thread:$0]  %s1391_s2, 256, %s1393_s29, [#allocation6], %s1626_s20, %s1626_s20, %s1627_s21  }
 0x316   :  { %1623 = dma.done.wait [#allocation6], 256  }
 0x317   :  { %1624 = vsyncadd [#allocation6], 4294967040 }
 0x318   :  { %1403 = vsyncpa [#allocation5], 1 }
 0x319   :  { %1404 = vsyncpa [#allocation9], 1 }
 0x31a   :  { %1405 = vsyncpa [#allocation6], 1 }
 0x31b   :  { %1406 = vsyncpa [#allocation7], 1 }

</bundles_post_ra>
